<compile_context>
chip_gen: v6e
topology: v6e:2x2x1
jax: 0.10.0
libtpu: 0.0.40
codegen_flags: <defaults>
</compile_context>

<pallas_src>
import jax
import jax.numpy as jnp
from jax import lax
from jax.experimental import pallas as pl
from jax.experimental.pallas import tpu as pltpu


def _d_rnn_gru_kernel(x_ref, wih_ref, bih_ref, whhT_ref, bhn_ref,
                      wlin_ref, blin_ref, out_ref, gx_ref):
    """Whole-forward kernel: (prefolded) GRU over T steps -> Linear -> Sigmoid.

    Refs:
      x_ref    : (T, B, 1)  raw d_input, time-major (normalization folded into
                            wih/bih by the wrapper)
      wih_ref  : (1, 3H) f32  folded input weights, gate order [r | z | n]
      bih_ref  : (1, 3H) f32  folded input biases; r/z slices already include
                              the corresponding b_hh slices
      whhT_ref : (H, 3H) bf16 stacked recurrent weights, transposed (h @ whhT)
      bhn_ref  : (1, H)  f32  n-gate recurrent bias (must stay inside r*(...))
      wlin_ref : (1, H)  f32  final Linear weight (row layout, lane-dense)
      blin_ref : (1, 1)  f32  final Linear bias
      out_ref  : (B, 1)       sigmoid(logits)
      gx_ref   : (T, B, 3H)   VMEM scratch for precomputed input-path gates
    """
    T, B, _ = x_ref.shape
    H = whhT_ref.shape[0]

    wih = wih_ref[...]          # (1, 3H) f32
    bih = bih_ref[...]          # (1, 3H) f32 (b_hh r/z folded in)
    whhT = whhT_ref[...]        # (H, 3H) bf16
    bhn = bhn_ref[...]          # (1, H)  f32

    # Hoisted input path: input_size == 1 so gx is a pure lane-broadcast.
    # Computed for every timestep at once, off the recurrence critical path.
    gx_ref[...] = x_ref[...] * wih[None, :, :] + bih[None, :, :]   # (T, B, 3H)

    def step(t, h):
        gx = gx_ref[t]                                             # (B, 3H) f32
        # Single fused bf16 MXU pass for all three gates; f32 accumulation.
        gh = jnp.dot(h.astype(jnp.bfloat16), whhT,
                     preferred_element_type=jnp.float32)           # (B, 3H)
        # Form gh_n right after the matmul so its lane realignment (XLU)
        # overlaps the EUP sigmoid below.
        gh_n = gh[:, 2 * H:] + bhn                                 # (B, H)
        # sigmoid(x) = 0.5*tanh(0.5*x) + 0.5 : one EUP push instead of two.
        rz = 0.5 * jnp.tanh(0.5 * (gx[:, :2 * H] + gh[:, :2 * H])) + 0.5
        r = rz[:, :H]
        z = rz[:, H:]
        n = jnp.tanh(gx[:, 2 * H:] + r * gh_n)
        return (1.0 - z) * n + z * h

    h0 = jnp.zeros((B, H), dtype=jnp.float32)
    h_last = lax.fori_loop(0, T, step, h0, unroll=True)

    # Linear(latent_size -> 1) + Sigmoid on the last hidden state.
    # VPU multiply + lane reduce instead of an MXU push for a 1-lane result.
    logits = jnp.sum(h_last * wlin_ref[...], axis=-1, keepdims=True) \
        + blin_ref[...]
    out_ref[...] = 0.5 * jnp.tanh(0.5 * logits) + 0.5              # (B, 1)


def init_d_rnn_params(key, latent_size):
    """Deterministic parameter init mirroring PyTorch's U(-1/sqrt(H), 1/sqrt(H))."""
    H = latent_size
    k = float(H) ** -0.5
    ks = jax.random.split(key, 6)
    return {
        "w_ih": jax.random.uniform(ks[0], (3, H, 1), jnp.float32, -k, k),
        "b_ih": jax.random.uniform(ks[1], (3, H, 1), jnp.float32, -k, k),
        "w_hh": jax.random.uniform(ks[2], (3, H, H), jnp.float32, -k, k),
        "b_hh": jax.random.uniform(ks[3], (3, H, 1), jnp.float32, -k, k),
        "w_lin": jax.random.uniform(ks[4], (1, H), jnp.float32, -k, k),
        "b_lin": jax.random.uniform(ks[5], (1, 1), jnp.float32, -k, k),
    }


def d_rnn_forward(params, cd, prediction, *, total_sequence_length,
                  condition_size, mean=0.0, std=1.0):
    """Equivalent of D_RNN.forward(cd, prediction) for rnn_cell_type='gru'.

    NOTE: for multiple independent (cd, prediction) evaluations, stack them
    along the batch axis before calling — the kernel is latency-bound on the
    T-step serial chain and nearly insensitive to B.
    """
    if float(std) == 0.0:
        raise ValueError("std must be nonzero (would produce inf/nan)")
    H = params["w_hh"].shape[-1]
    T = total_sequence_length

    pred2d = prediction.reshape(-1, total_sequence_length - condition_size)
    d_input = jnp.concatenate([cd, pred2d], axis=1)             # (B, T)
    assert d_input.shape[1] == T
    B = d_input.shape[0]
    x_tb1 = d_input.T.astype(jnp.float32)[:, :, None]           # (T, B, 1)

    # Fold (x - mean)/std into the input weights/biases (exact algebra):
    #   w_ih' = w_ih/std ; b_ih' = b_ih - w_ih*mean/std
    inv_std = 1.0 / float(std)
    w_ih = params["w_ih"].astype(jnp.float32)[:, :, 0]          # (3, H)
    b_ih = params["b_ih"].astype(jnp.float32)[:, :, 0]          # (3, H)
    b_hh = params["b_hh"].astype(jnp.float32)[:, :, 0]          # (3, H)

    wih_folded = (w_ih * inv_std)                               # (3, H)
    bih_folded = b_ih - w_ih * (float(mean) * inv_std)          # (3, H)
    # Fold the r/z slices of b_hh into the hoisted bias; keep the n-slice
    # separate (it must remain inside r * (W_hn h + b_hn)).
    bih_folded = bih_folded.at[0].add(b_hh[0]).at[1].add(b_hh[1])

    wih_row = wih_folded.reshape(1, 3 * H)                      # (1, 3H)
    bih_row = bih_folded.reshape(1, 3 * H)                      # (1, 3H)
    bhn_row = b_hh[2].reshape(1, H)                             # (1, H)
    whh_T = params["w_hh"].astype(jnp.float32).reshape(3 * H, H).T  # (H, 3H)
    whh_T_bf16 = whh_T.astype(jnp.bfloat16)                    # single MXU pass
    wlin_row = params["w_lin"].astype(jnp.float32).reshape(1, H)  # (1, H)
    blin = params["b_lin"].astype(jnp.float32).reshape(1, 1)    # (1, 1)

    out = pl.pallas_call(
        _d_rnn_gru_kernel,
        out_shape=jax.ShapeDtypeStruct((B, 1), jnp.float32),
        in_specs=[pl.BlockSpec(memory_space=pltpu.MemorySpace.VMEM)] * 7,
        out_specs=pl.BlockSpec(memory_space=pltpu.MemorySpace.VMEM),
        scratch_shapes=[pltpu.VMEM((T, B, 3 * H), jnp.float32)],
    )(x_tb1, wih_row, bih_row, whh_T_bf16, bhn_row, wlin_row, blin)
    return out                                                  # (B, 1)


def _d_rnn_reference(params, cd, prediction, *, total_sequence_length,
                     condition_size, mean=0.0, std=1.0):
    """Pure-JAX reference matching the PyTorch GRU semantics."""
    pred2d = prediction.reshape(-1, total_sequence_length - condition_size)
    d_input = (jnp.concatenate([cd, pred2d], axis=1) - mean) / std     # (B, T)
    B, T = d_input.shape
    H = params["w_hh"].shape[-1]
    w_ih = params["w_ih"][:, :, 0]      # (3, H)
    b_ih = params["b_ih"][:, :, 0]
    w_hh = params["w_hh"]               # (3, H, H)
    b_hh = params["b_hh"][:, :, 0]
    h = jnp.zeros((B, H), jnp.float32)
    for t in range(T):
        xt = d_input[:, t:t + 1]                                       # (B, 1)
        r = jax.nn.sigmoid(xt * w_ih[0] + b_ih[0] + h @ w_hh[0].T + b_hh[0])
        z = jax.nn.sigmoid(xt * w_ih[1] + b_ih[1] + h @ w_hh[1].T + b_hh[1])
        n = jnp.tanh(xt * w_ih[2] + b_ih[2] + r * (h @ w_hh[2].T + b_hh[2]))
        h = (1.0 - z) * n + z * h
    logits = h @ params["w_lin"].T + params["b_lin"]
    return jax.nn.sigmoid(logits)


if __name__ == "__main__":
    total_sequence_length = 24
    condition_size = 8
    latent_size = 32
    batch = 2

    key = jax.random.PRNGKey(0)
    k_param, k_cd, k_pred = jax.random.split(key, 3)

    params = init_d_rnn_params(k_param, latent_size)
    cd = jax.random.normal(k_cd, (batch, condition_size), dtype=jnp.float32)
    prediction = jax.random.normal(
        k_pred, (batch, total_sequence_length - condition_size),
        dtype=jnp.float32)

    out = d_rnn_forward(params, cd, prediction,
                        total_sequence_length=total_sequence_length,
                        condition_size=condition_size,
                        mean=0.0, std=1.0)
    out = jax.block_until_ready(out)
    assert out.shape == (batch, 1)
    assert bool(jnp.all(jnp.isfinite(out)))

    ref = _d_rnn_reference(params, cd, prediction,
                           total_sequence_length=total_sequence_length,
                           condition_size=condition_size,
                           mean=0.0, std=1.0)
    assert bool(jnp.allclose(out, ref, atol=1e-2, rtol=1e-2)), (out, ref)
    print("KERNEL_OK")
</pallas_src>

<mosaic_0001>
module attributes {stable_mosaic.version = 11 : i64} {
  func.func @_d_rnn_gru_kernel(%arg0: memref<24x2x1xf32, #tpu.memory_space<vmem>>, %arg1: memref<1x96xf32, #tpu.memory_space<vmem>>, %arg2: memref<1x96xf32, #tpu.memory_space<vmem>>, %arg3: memref<32x96xbf16, #tpu.memory_space<vmem>>, %arg4: memref<1x32xf32, #tpu.memory_space<vmem>>, %arg5: memref<1x32xf32, #tpu.memory_space<vmem>>, %arg6: memref<1x1xf32, #tpu.memory_space<vmem>>, %arg7: memref<2x1xf32, #tpu.memory_space<vmem>>, %arg8: memref<24x2x96xf32, #tpu.memory_space<vmem>>) attributes {dimension_semantics = [], scalar_prefetch = 0 : i64, scratch_operands = 1 : i64, tpu.core_type = #tpu.core_type<tc>} {
    %c0 = arith.constant 0 : index
    %c0_0 = arith.constant 0 : index
    %0 = vector.load %arg1[%c0, %c0_0] : memref<1x96xf32, #tpu.memory_space<vmem>>, vector<1x96xf32>
    %c0_1 = arith.constant 0 : index
    %c0_2 = arith.constant 0 : index
    %1 = vector.load %arg2[%c0_1, %c0_2] : memref<1x96xf32, #tpu.memory_space<vmem>>, vector<1x96xf32>
    %c0_3 = arith.constant 0 : index
    %c0_4 = arith.constant 0 : index
    %2 = vector.load %arg3[%c0_3, %c0_4] : memref<32x96xbf16, #tpu.memory_space<vmem>>, vector<32x96xbf16>
    %c0_5 = arith.constant 0 : index
    %c0_6 = arith.constant 0 : index
    %3 = vector.load %arg4[%c0_5, %c0_6] : memref<1x32xf32, #tpu.memory_space<vmem>>, vector<1x32xf32>
    %c0_7 = arith.constant 0 : index
    %c0_8 = arith.constant 0 : index
    %c0_9 = arith.constant 0 : index
    %4 = vector.load %arg0[%c0_7, %c0_8, %c0_9] : memref<24x2x1xf32, #tpu.memory_space<vmem>>, vector<24x2x1xf32>
    %5 = vector.shape_cast %0 : vector<1x96xf32> to vector<1x1x96xf32>
    %6 = vector.broadcast %4 : vector<24x2x1xf32> to vector<24x2x96xf32>
    %7 = vector.broadcast %5 : vector<1x1x96xf32> to vector<24x2x96xf32>
    %8 = arith.mulf %6, %7 : vector<24x2x96xf32>
    %9 = vector.shape_cast %1 : vector<1x96xf32> to vector<1x1x96xf32>
    %10 = vector.broadcast %9 : vector<1x1x96xf32> to vector<24x2x96xf32>
    %11 = arith.addf %8, %10 : vector<24x2x96xf32>
    %c0_10 = arith.constant 0 : index
    %c0_11 = arith.constant 0 : index
    %c0_12 = arith.constant 0 : index
    %12 = vector.load %arg8[%c0_10, %c0_11, %c0_12] : memref<24x2x96xf32, #tpu.memory_space<vmem>>, vector<24x2x96xf32>
    tpu.vector_store %arg8[%c0_10, %c0_11, %c0_12], %11 {strides = array<i32>} : memref<24x2x96xf32, #tpu.memory_space<vmem>>, vector<24x2x96xf32>,
    %cst = arith.constant 0.000000e+00 : f32
    %13 = vector.broadcast %cst : f32 to vector<2x32xf32>
    %c0_i32 = arith.constant 0 : i32
    %14 = arith.index_cast %c0_i32 : i32 to index
    %c0_13 = arith.constant 0 : index
    %c0_14 = arith.constant 0 : index
    %15 = vector.load %arg8[%14, %c0_13, %c0_14] : memref<24x2x96xf32, #tpu.memory_space<vmem>>, vector<1x2x96xf32>
    %16 = vector.shape_cast %15 : vector<1x2x96xf32> to vector<2x96xf32>
    %17 = arith.truncf %13 : vector<2x32xf32> to vector<2x32xbf16>
    %cst_15 = arith.constant dense<0.000000e+00> : vector<2x96xf32>
    %18 = tpu.matmul %17, %2, %cst_15 {dimension_numbers = #tpu.dot_dimension_numbers<[1], [0], [0], [1], [0, 0, 1, 1], [], []>} : vector<2x32xbf16>, vector<32x96xbf16>, vector<2x96xf32> -> vector<2x96xf32>
    %19 = vector.extract_strided_slice %18 {offsets = [0, 64], sizes = [2, 32], strides = [1, 1]} : vector<2x96xf32> to vector<2x32xf32>
    %20 = vector.broadcast %3 : vector<1x32xf32> to vector<2x32xf32>
    %21 = arith.addf %19, %20 : vector<2x32xf32>
    %22 = vector.extract_strided_slice %16 {offsets = [0, 0], sizes = [2, 64], strides = [1, 1]} : vector<2x96xf32> to vector<2x64xf32>
    %23 = vector.extract_strided_slice %18 {offsets = [0, 0], sizes = [2, 64], strides = [1, 1]} : vector<2x96xf32> to vector<2x64xf32>
    %24 = arith.addf %22, %23 : vector<2x64xf32>
    %cst_16 = arith.constant 5.000000e-01 : f32
    %25 = vector.broadcast %cst_16 : f32 to vector<2x64xf32>
    %26 = arith.mulf %25, %24 : vector<2x64xf32>
    %27 = math.tanh %26 : vector<2x64xf32>
    %cst_17 = arith.constant 5.000000e-01 : f32
    %28 = vector.broadcast %cst_17 : f32 to vector<2x64xf32>
    %29 = arith.mulf %28, %27 : vector<2x64xf32>
    %cst_18 = arith.constant 5.000000e-01 : f32
    %30 = vector.broadcast %cst_18 : f32 to vector<2x64xf32>
    %31 = arith.addf %29, %30 : vector<2x64xf32>
    %32 = vector.extract_strided_slice %31 {offsets = [0, 0], sizes = [2, 32], strides = [1, 1]} : vector<2x64xf32> to vector<2x32xf32>
    %33 = vector.extract_strided_slice %31 {offsets = [0, 32], sizes = [2, 32], strides = [1, 1]} : vector<2x64xf32> to vector<2x32xf32>
    %34 = vector.extract_strided_slice %16 {offsets = [0, 64], sizes = [2, 32], strides = [1, 1]} : vector<2x96xf32> to vector<2x32xf32>
    %35 = arith.mulf %32, %21 : vector<2x32xf32>
    %36 = arith.addf %34, %35 : vector<2x32xf32>
    %37 = math.tanh %36 : vector<2x32xf32>
    %cst_19 = arith.constant 1.000000e+00 : f32
    %38 = vector.broadcast %cst_19 : f32 to vector<2x32xf32>
    %39 = arith.subf %38, %33 : vector<2x32xf32>
    %40 = arith.mulf %39, %37 : vector<2x32xf32>
    %41 = arith.mulf %33, %13 : vector<2x32xf32>
    %42 = arith.addf %40, %41 : vector<2x32xf32>
    %c1_i32 = arith.constant 1 : i32
    %43 = arith.index_cast %c1_i32 : i32 to index
    %c0_20 = arith.constant 0 : index
    %c0_21 = arith.constant 0 : index
    %44 = vector.load %arg8[%43, %c0_20, %c0_21] : memref<24x2x96xf32, #tpu.memory_space<vmem>>, vector<1x2x96xf32>
    %45 = vector.shape_cast %44 : vector<1x2x96xf32> to vector<2x96xf32>
    %46 = arith.truncf %42 : vector<2x32xf32> to vector<2x32xbf16>
    %cst_22 = arith.constant dense<0.000000e+00> : vector<2x96xf32>
    %47 = tpu.matmul %46, %2, %cst_22 {dimension_numbers = #tpu.dot_dimension_numbers<[1], [0], [0], [1], [0, 0, 1, 1], [], []>} : vector<2x32xbf16>, vector<32x96xbf16>, vector<2x96xf32> -> vector<2x96xf32>
    %48 = vector.extract_strided_slice %47 {offsets = [0, 64], sizes = [2, 32], strides = [1, 1]} : vector<2x96xf32> to vector<2x32xf32>
    %49 = vector.broadcast %3 : vector<1x32xf32> to vector<2x32xf32>
    %50 = arith.addf %48, %49 : vector<2x32xf32>
    %51 = vector.extract_strided_slice %45 {offsets = [0, 0], sizes = [2, 64], strides = [1, 1]} : vector<2x96xf32> to vector<2x64xf32>
    %52 = vector.extract_strided_slice %47 {offsets = [0, 0], sizes = [2, 64], strides = [1, 1]} : vector<2x96xf32> to vector<2x64xf32>
    %53 = arith.addf %51, %52 : vector<2x64xf32>
    %cst_23 = arith.constant 5.000000e-01 : f32
    %54 = vector.broadcast %cst_23 : f32 to vector<2x64xf32>
    %55 = arith.mulf %54, %53 : vector<2x64xf32>
    %56 = math.tanh %55 : vector<2x64xf32>
    %cst_24 = arith.constant 5.000000e-01 : f32
    %57 = vector.broadcast %cst_24 : f32 to vector<2x64xf32>
    %58 = arith.mulf %57, %56 : vector<2x64xf32>
    %cst_25 = arith.constant 5.000000e-01 : f32
    %59 = vector.broadcast %cst_25 : f32 to vector<2x64xf32>
    %60 = arith.addf %58, %59 : vector<2x64xf32>
    %61 = vector.extract_strided_slice %60 {offsets = [0, 0], sizes = [2, 32], strides = [1, 1]} : vector<2x64xf32> to vector<2x32xf32>
    %62 = vector.extract_strided_slice %60 {offsets = [0, 32], sizes = [2, 32], strides = [1, 1]} : vector<2x64xf32> to vector<2x32xf32>
    %63 = vector.extract_strided_slice %45 {offsets = [0, 64], sizes = [2, 32], strides = [1, 1]} : vector<2x96xf32> to vector<2x32xf32>
    %64 = arith.mulf %61, %50 : vector<2x32xf32>
    %65 = arith.addf %63, %64 : vector<2x32xf32>
    %66 = math.tanh %65 : vector<2x32xf32>
    %cst_26 = arith.constant 1.000000e+00 : f32
    %67 = vector.broadcast %cst_26 : f32 to vector<2x32xf32>
    %68 = arith.subf %67, %62 : vector<2x32xf32>
    %69 = arith.mulf %68, %66 : vector<2x32xf32>
    %70 = arith.mulf %62, %42 : vector<2x32xf32>
    %71 = arith.addf %69, %70 : vector<2x32xf32>
    %c2_i32 = arith.constant 2 : i32
    %72 = arith.index_cast %c2_i32 : i32 to index
    %c0_27 = arith.constant 0 : index
    %c0_28 = arith.constant 0 : index
    %73 = vector.load %arg8[%72, %c0_27, %c0_28] : memref<24x2x96xf32, #tpu.memory_space<vmem>>, vector<1x2x96xf32>
    %74 = vector.shape_cast %73 : vector<1x2x96xf32> to vector<2x96xf32>
    %75 = arith.truncf %71 : vector<2x32xf32> to vector<2x32xbf16>
    %cst_29 = arith.constant dense<0.000000e+00> : vector<2x96xf32>
    %76 = tpu.matmul %75, %2, %cst_29 {dimension_numbers = #tpu.dot_dimension_numbers<[1], [0], [0], [1], [0, 0, 1, 1], [], []>} : vector<2x32xbf16>, vector<32x96xbf16>, vector<2x96xf32> -> vector<2x96xf32>
    %77 = vector.extract_strided_slice %76 {offsets = [0, 64], sizes = [2, 32], strides = [1, 1]} : vector<2x96xf32> to vector<2x32xf32>
    %78 = vector.broadcast %3 : vector<1x32xf32> to vector<2x32xf32>
    %79 = arith.addf %77, %78 : vector<2x32xf32>
    %80 = vector.extract_strided_slice %74 {offsets = [0, 0], sizes = [2, 64], strides = [1, 1]} : vector<2x96xf32> to vector<2x64xf32>
    %81 = vector.extract_strided_slice %76 {offsets = [0, 0], sizes = [2, 64], strides = [1, 1]} : vector<2x96xf32> to vector<2x64xf32>
    %82 = arith.addf %80, %81 : vector<2x64xf32>
    %cst_30 = arith.constant 5.000000e-01 : f32
    %83 = vector.broadcast %cst_30 : f32 to vector<2x64xf32>
    %84 = arith.mulf %83, %82 : vector<2x64xf32>
    %85 = math.tanh %84 : vector<2x64xf32>
    %cst_31 = arith.constant 5.000000e-01 : f32
    %86 = vector.broadcast %cst_31 : f32 to vector<2x64xf32>
    %87 = arith.mulf %86, %85 : vector<2x64xf32>
    %cst_32 = arith.constant 5.000000e-01 : f32
    %88 = vector.broadcast %cst_32 : f32 to vector<2x64xf32>
    %89 = arith.addf %87, %88 : vector<2x64xf32>
    %90 = vector.extract_strided_slice %89 {offsets = [0, 0], sizes = [2, 32], strides = [1, 1]} : vector<2x64xf32> to vector<2x32xf32>
    %91 = vector.extract_strided_slice %89 {offsets = [0, 32], sizes = [2, 32], strides = [1, 1]} : vector<2x64xf32> to vector<2x32xf32>
    %92 = vector.extract_strided_slice %74 {offsets = [0, 64], sizes = [2, 32], strides = [1, 1]} : vector<2x96xf32> to vector<2x32xf32>
    %93 = arith.mulf %90, %79 : vector<2x32xf32>
    %94 = arith.addf %92, %93 : vector<2x32xf32>
    %95 = math.tanh %94 : vector<2x32xf32>
    %cst_33 = arith.constant 1.000000e+00 : f32
    %96 = vector.broadcast %cst_33 : f32 to vector<2x32xf32>
    %97 = arith.subf %96, %91 : vector<2x32xf32>
    %98 = arith.mulf %97, %95 : vector<2x32xf32>
    %99 = arith.mulf %91, %71 : vector<2x32xf32>
    %100 = arith.addf %98, %99 : vector<2x32xf32>
    %c3_i32 = arith.constant 3 : i32
    %101 = arith.index_cast %c3_i32 : i32 to index
    %c0_34 = arith.constant 0 : index
    %c0_35 = arith.constant 0 : index
    %102 = vector.load %arg8[%101, %c0_34, %c0_35] : memref<24x2x96xf32, #tpu.memory_space<vmem>>, vector<1x2x96xf32>
    %103 = vector.shape_cast %102 : vector<1x2x96xf32> to vector<2x96xf32>
    %104 = arith.truncf %100 : vector<2x32xf32> to vector<2x32xbf16>
    %cst_36 = arith.constant dense<0.000000e+00> : vector<2x96xf32>
    %105 = tpu.matmul %104, %2, %cst_36 {dimension_numbers = #tpu.dot_dimension_numbers<[1], [0], [0], [1], [0, 0, 1, 1], [], []>} : vector<2x32xbf16>, vector<32x96xbf16>, vector<2x96xf32> -> vector<2x96xf32>
    %106 = vector.extract_strided_slice %105 {offsets = [0, 64], sizes = [2, 32], strides = [1, 1]} : vector<2x96xf32> to vector<2x32xf32>
    %107 = vector.broadcast %3 : vector<1x32xf32> to vector<2x32xf32>
    %108 = arith.addf %106, %107 : vector<2x32xf32>
    %109 = vector.extract_strided_slice %103 {offsets = [0, 0], sizes = [2, 64], strides = [1, 1]} : vector<2x96xf32> to vector<2x64xf32>
    %110 = vector.extract_strided_slice %105 {offsets = [0, 0], sizes = [2, 64], strides = [1, 1]} : vector<2x96xf32> to vector<2x64xf32>
    %111 = arith.addf %109, %110 : vector<2x64xf32>
    %cst_37 = arith.constant 5.000000e-01 : f32
    %112 = vector.broadcast %cst_37 : f32 to vector<2x64xf32>
    %113 = arith.mulf %112, %111 : vector<2x64xf32>
    %114 = math.tanh %113 : vector<2x64xf32>
    %cst_38 = arith.constant 5.000000e-01 : f32
    %115 = vector.broadcast %cst_38 : f32 to vector<2x64xf32>
    %116 = arith.mulf %115, %114 : vector<2x64xf32>
    %cst_39 = arith.constant 5.000000e-01 : f32
    %117 = vector.broadcast %cst_39 : f32 to vector<2x64xf32>
    %118 = arith.addf %116, %117 : vector<2x64xf32>
    %119 = vector.extract_strided_slice %118 {offsets = [0, 0], sizes = [2, 32], strides = [1, 1]} : vector<2x64xf32> to vector<2x32xf32>
    %120 = vector.extract_strided_slice %118 {offsets = [0, 32], sizes = [2, 32], strides = [1, 1]} : vector<2x64xf32> to vector<2x32xf32>
    %121 = vector.extract_strided_slice %103 {offsets = [0, 64], sizes = [2, 32], strides = [1, 1]} : vector<2x96xf32> to vector<2x32xf32>
    %122 = arith.mulf %119, %108 : vector<2x32xf32>
    %123 = arith.addf %121, %122 : vector<2x32xf32>
    %124 = math.tanh %123 : vector<2x32xf32>
    %cst_40 = arith.constant 1.000000e+00 : f32
    %125 = vector.broadcast %cst_40 : f32 to vector<2x32xf32>
    %126 = arith.subf %125, %120 : vector<2x32xf32>
    %127 = arith.mulf %126, %124 : vector<2x32xf32>
    %128 = arith.mulf %120, %100 : vector<2x32xf32>
    %129 = arith.addf %127, %128 : vector<2x32xf32>
    %c4_i32 = arith.constant 4 : i32
    %130 = arith.index_cast %c4_i32 : i32 to index
    %c0_41 = arith.constant 0 : index
    %c0_42 = arith.constant 0 : index
    %131 = vector.load %arg8[%130, %c0_41, %c0_42] : memref<24x2x96xf32, #tpu.memory_space<vmem>>, vector<1x2x96xf32>
    %132 = vector.shape_cast %131 : vector<1x2x96xf32> to vector<2x96xf32>
    %133 = arith.truncf %129 : vector<2x32xf32> to vector<2x32xbf16>
    %cst_43 = arith.constant dense<0.000000e+00> : vector<2x96xf32>
    %134 = tpu.matmul %133, %2, %cst_43 {dimension_numbers = #tpu.dot_dimension_numbers<[1], [0], [0], [1], [0, 0, 1, 1], [], []>} : vector<2x32xbf16>, vector<32x96xbf16>, vector<2x96xf32> -> vector<2x96xf32>
    %135 = vector.extract_strided_slice %134 {offsets = [0, 64], sizes = [2, 32], strides = [1, 1]} : vector<2x96xf32> to vector<2x32xf32>
    %136 = vector.broadcast %3 : vector<1x32xf32> to vector<2x32xf32>
    %137 = arith.addf %135, %136 : vector<2x32xf32>
    %138 = vector.extract_strided_slice %132 {offsets = [0, 0], sizes = [2, 64], strides = [1, 1]} : vector<2x96xf32> to vector<2x64xf32>
    %139 = vector.extract_strided_slice %134 {offsets = [0, 0], sizes = [2, 64], strides = [1, 1]} : vector<2x96xf32> to vector<2x64xf32>
    %140 = arith.addf %138, %139 : vector<2x64xf32>
    %cst_44 = arith.constant 5.000000e-01 : f32
    %141 = vector.broadcast %cst_44 : f32 to vector<2x64xf32>
    %142 = arith.mulf %141, %140 : vector<2x64xf32>
    %143 = math.tanh %142 : vector<2x64xf32>
    %cst_45 = arith.constant 5.000000e-01 : f32
    %144 = vector.broadcast %cst_45 : f32 to vector<2x64xf32>
    %145 = arith.mulf %144, %143 : vector<2x64xf32>
    %cst_46 = arith.constant 5.000000e-01 : f32
    %146 = vector.broadcast %cst_46 : f32 to vector<2x64xf32>
    %147 = arith.addf %145, %146 : vector<2x64xf32>
    %148 = vector.extract_strided_slice %147 {offsets = [0, 0], sizes = [2, 32], strides = [1, 1]} : vector<2x64xf32> to vector<2x32xf32>
    %149 = vector.extract_strided_slice %147 {offsets = [0, 32], sizes = [2, 32], strides = [1, 1]} : vector<2x64xf32> to vector<2x32xf32>
    %150 = vector.extract_strided_slice %132 {offsets = [0, 64], sizes = [2, 32], strides = [1, 1]} : vector<2x96xf32> to vector<2x32xf32>
    %151 = arith.mulf %148, %137 : vector<2x32xf32>
    %152 = arith.addf %150, %151 : vector<2x32xf32>
    %153 = math.tanh %152 : vector<2x32xf32>
    %cst_47 = arith.constant 1.000000e+00 : f32
    %154 = vector.broadcast %cst_47 : f32 to vector<2x32xf32>
    %155 = arith.subf %154, %149 : vector<2x32xf32>
    %156 = arith.mulf %155, %153 : vector<2x32xf32>
    %157 = arith.mulf %149, %129 : vector<2x32xf32>
    %158 = arith.addf %156, %157 : vector<2x32xf32>
    %c5_i32 = arith.constant 5 : i32
    %159 = arith.index_cast %c5_i32 : i32 to index
    %c0_48 = arith.constant 0 : index
    %c0_49 = arith.constant 0 : index
    %160 = vector.load %arg8[%159, %c0_48, %c0_49] : memref<24x2x96xf32, #tpu.memory_space<vmem>>, vector<1x2x96xf32>
    %161 = vector.shape_cast %160 : vector<1x2x96xf32> to vector<2x96xf32>
    %162 = arith.truncf %158 : vector<2x32xf32> to vector<2x32xbf16>
    %cst_50 = arith.constant dense<0.000000e+00> : vector<2x96xf32>
    %163 = tpu.matmul %162, %2, %cst_50 {dimension_numbers = #tpu.dot_dimension_numbers<[1], [0], [0], [1], [0, 0, 1, 1], [], []>} : vector<2x32xbf16>, vector<32x96xbf16>, vector<2x96xf32> -> vector<2x96xf32>
    %164 = vector.extract_strided_slice %163 {offsets = [0, 64], sizes = [2, 32], strides = [1, 1]} : vector<2x96xf32> to vector<2x32xf32>
    %165 = vector.broadcast %3 : vector<1x32xf32> to vector<2x32xf32>
    %166 = arith.addf %164, %165 : vector<2x32xf32>
    %167 = vector.extract_strided_slice %161 {offsets = [0, 0], sizes = [2, 64], strides = [1, 1]} : vector<2x96xf32> to vector<2x64xf32>
    %168 = vector.extract_strided_slice %163 {offsets = [0, 0], sizes = [2, 64], strides = [1, 1]} : vector<2x96xf32> to vector<2x64xf32>
    %169 = arith.addf %167, %168 : vector<2x64xf32>
    %cst_51 = arith.constant 5.000000e-01 : f32
    %170 = vector.broadcast %cst_51 : f32 to vector<2x64xf32>
    %171 = arith.mulf %170, %169 : vector<2x64xf32>
    %172 = math.tanh %171 : vector<2x64xf32>
    %cst_52 = arith.constant 5.000000e-01 : f32
    %173 = vector.broadcast %cst_52 : f32 to vector<2x64xf32>
    %174 = arith.mulf %173, %172 : vector<2x64xf32>
    %cst_53 = arith.constant 5.000000e-01 : f32
    %175 = vector.broadcast %cst_53 : f32 to vector<2x64xf32>
    %176 = arith.addf %174, %175 : vector<2x64xf32>
    %177 = vector.extract_strided_slice %176 {offsets = [0, 0], sizes = [2, 32], strides = [1, 1]} : vector<2x64xf32> to vector<2x32xf32>
    %178 = vector.extract_strided_slice %176 {offsets = [0, 32], sizes = [2, 32], strides = [1, 1]} : vector<2x64xf32> to vector<2x32xf32>
    %179 = vector.extract_strided_slice %161 {offsets = [0, 64], sizes = [2, 32], strides = [1, 1]} : vector<2x96xf32> to vector<2x32xf32>
    %180 = arith.mulf %177, %166 : vector<2x32xf32>
    %181 = arith.addf %179, %180 : vector<2x32xf32>
    %182 = math.tanh %181 : vector<2x32xf32>
    %cst_54 = arith.constant 1.000000e+00 : f32
    %183 = vector.broadcast %cst_54 : f32 to vector<2x32xf32>
    %184 = arith.subf %183, %178 : vector<2x32xf32>
    %185 = arith.mulf %184, %182 : vector<2x32xf32>
    %186 = arith.mulf %178, %158 : vector<2x32xf32>
    %187 = arith.addf %185, %186 : vector<2x32xf32>
    %c6_i32 = arith.constant 6 : i32
    %188 = arith.index_cast %c6_i32 : i32 to index
    %c0_55 = arith.constant 0 : index
    %c0_56 = arith.constant 0 : index
    %189 = vector.load %arg8[%188, %c0_55, %c0_56] : memref<24x2x96xf32, #tpu.memory_space<vmem>>, vector<1x2x96xf32>
    %190 = vector.shape_cast %189 : vector<1x2x96xf32> to vector<2x96xf32>
    %191 = arith.truncf %187 : vector<2x32xf32> to vector<2x32xbf16>
    %cst_57 = arith.constant dense<0.000000e+00> : vector<2x96xf32>
    %192 = tpu.matmul %191, %2, %cst_57 {dimension_numbers = #tpu.dot_dimension_numbers<[1], [0], [0], [1], [0, 0, 1, 1], [], []>} : vector<2x32xbf16>, vector<32x96xbf16>, vector<2x96xf32> -> vector<2x96xf32>
    %193 = vector.extract_strided_slice %192 {offsets = [0, 64], sizes = [2, 32], strides = [1, 1]} : vector<2x96xf32> to vector<2x32xf32>
    %194 = vector.broadcast %3 : vector<1x32xf32> to vector<2x32xf32>
    %195 = arith.addf %193, %194 : vector<2x32xf32>
    %196 = vector.extract_strided_slice %190 {offsets = [0, 0], sizes = [2, 64], strides = [1, 1]} : vector<2x96xf32> to vector<2x64xf32>
    %197 = vector.extract_strided_slice %192 {offsets = [0, 0], sizes = [2, 64], strides = [1, 1]} : vector<2x96xf32> to vector<2x64xf32>
    %198 = arith.addf %196, %197 : vector<2x64xf32>
    %cst_58 = arith.constant 5.000000e-01 : f32
    %199 = vector.broadcast %cst_58 : f32 to vector<2x64xf32>
    %200 = arith.mulf %199, %198 : vector<2x64xf32>
    %201 = math.tanh %200 : vector<2x64xf32>
    %cst_59 = arith.constant 5.000000e-01 : f32
    %202 = vector.broadcast %cst_59 : f32 to vector<2x64xf32>
    %203 = arith.mulf %202, %201 : vector<2x64xf32>
    %cst_60 = arith.constant 5.000000e-01 : f32
    %204 = vector.broadcast %cst_60 : f32 to vector<2x64xf32>
    %205 = arith.addf %203, %204 : vector<2x64xf32>
    %206 = vector.extract_strided_slice %205 {offsets = [0, 0], sizes = [2, 32], strides = [1, 1]} : vector<2x64xf32> to vector<2x32xf32>
    %207 = vector.extract_strided_slice %205 {offsets = [0, 32], sizes = [2, 32], strides = [1, 1]} : vector<2x64xf32> to vector<2x32xf32>
    %208 = vector.extract_strided_slice %190 {offsets = [0, 64], sizes = [2, 32], strides = [1, 1]} : vector<2x96xf32> to vector<2x32xf32>
    %209 = arith.mulf %206, %195 : vector<2x32xf32>
    %210 = arith.addf %208, %209 : vector<2x32xf32>
    %211 = math.tanh %210 : vector<2x32xf32>
    %cst_61 = arith.constant 1.000000e+00 : f32
    %212 = vector.broadcast %cst_61 : f32 to vector<2x32xf32>
    %213 = arith.subf %212, %207 : vector<2x32xf32>
    %214 = arith.mulf %213, %211 : vector<2x32xf32>
    %215 = arith.mulf %207, %187 : vector<2x32xf32>
    %216 = arith.addf %214, %215 : vector<2x32xf32>
    %c7_i32 = arith.constant 7 : i32
    %217 = arith.index_cast %c7_i32 : i32 to index
    %c0_62 = arith.constant 0 : index
    %c0_63 = arith.constant 0 : index
    %218 = vector.load %arg8[%217, %c0_62, %c0_63] : memref<24x2x96xf32, #tpu.memory_space<vmem>>, vector<1x2x96xf32>
    %219 = vector.shape_cast %218 : vector<1x2x96xf32> to vector<2x96xf32>
    %220 = arith.truncf %216 : vector<2x32xf32> to vector<2x32xbf16>
    %cst_64 = arith.constant dense<0.000000e+00> : vector<2x96xf32>
    %221 = tpu.matmul %220, %2, %cst_64 {dimension_numbers = #tpu.dot_dimension_numbers<[1], [0], [0], [1], [0, 0, 1, 1], [], []>} : vector<2x32xbf16>, vector<32x96xbf16>, vector<2x96xf32> -> vector<2x96xf32>
    %222 = vector.extract_strided_slice %221 {offsets = [0, 64], sizes = [2, 32], strides = [1, 1]} : vector<2x96xf32> to vector<2x32xf32>
    %223 = vector.broadcast %3 : vector<1x32xf32> to vector<2x32xf32>
    %224 = arith.addf %222, %223 : vector<2x32xf32>
    %225 = vector.extract_strided_slice %219 {offsets = [0, 0], sizes = [2, 64], strides = [1, 1]} : vector<2x96xf32> to vector<2x64xf32>
    %226 = vector.extract_strided_slice %221 {offsets = [0, 0], sizes = [2, 64], strides = [1, 1]} : vector<2x96xf32> to vector<2x64xf32>
    %227 = arith.addf %225, %226 : vector<2x64xf32>
    %cst_65 = arith.constant 5.000000e-01 : f32
    %228 = vector.broadcast %cst_65 : f32 to vector<2x64xf32>
    %229 = arith.mulf %228, %227 : vector<2x64xf32>
    %230 = math.tanh %229 : vector<2x64xf32>
    %cst_66 = arith.constant 5.000000e-01 : f32
    %231 = vector.broadcast %cst_66 : f32 to vector<2x64xf32>
    %232 = arith.mulf %231, %230 : vector<2x64xf32>
    %cst_67 = arith.constant 5.000000e-01 : f32
    %233 = vector.broadcast %cst_67 : f32 to vector<2x64xf32>
    %234 = arith.addf %232, %233 : vector<2x64xf32>
    %235 = vector.extract_strided_slice %234 {offsets = [0, 0], sizes = [2, 32], strides = [1, 1]} : vector<2x64xf32> to vector<2x32xf32>
    %236 = vector.extract_strided_slice %234 {offsets = [0, 32], sizes = [2, 32], strides = [1, 1]} : vector<2x64xf32> to vector<2x32xf32>
    %237 = vector.extract_strided_slice %219 {offsets = [0, 64], sizes = [2, 32], strides = [1, 1]} : vector<2x96xf32> to vector<2x32xf32>
    %238 = arith.mulf %235, %224 : vector<2x32xf32>
    %239 = arith.addf %237, %238 : vector<2x32xf32>
    %240 = math.tanh %239 : vector<2x32xf32>
    %cst_68 = arith.constant 1.000000e+00 : f32
    %241 = vector.broadcast %cst_68 : f32 to vector<2x32xf32>
    %242 = arith.subf %241, %236 : vector<2x32xf32>
    %243 = arith.mulf %242, %240 : vector<2x32xf32>
    %244 = arith.mulf %236, %216 : vector<2x32xf32>
    %245 = arith.addf %243, %244 : vector<2x32xf32>
    %c8_i32 = arith.constant 8 : i32
    %246 = arith.index_cast %c8_i32 : i32 to index
    %c0_69 = arith.constant 0 : index
    %c0_70 = arith.constant 0 : index
    %247 = vector.load %arg8[%246, %c0_69, %c0_70] : memref<24x2x96xf32, #tpu.memory_space<vmem>>, vector<1x2x96xf32>
    %248 = vector.shape_cast %247 : vector<1x2x96xf32> to vector<2x96xf32>
    %249 = arith.truncf %245 : vector<2x32xf32> to vector<2x32xbf16>
    %cst_71 = arith.constant dense<0.000000e+00> : vector<2x96xf32>
    %250 = tpu.matmul %249, %2, %cst_71 {dimension_numbers = #tpu.dot_dimension_numbers<[1], [0], [0], [1], [0, 0, 1, 1], [], []>} : vector<2x32xbf16>, vector<32x96xbf16>, vector<2x96xf32> -> vector<2x96xf32>
    %251 = vector.extract_strided_slice %250 {offsets = [0, 64], sizes = [2, 32], strides = [1, 1]} : vector<2x96xf32> to vector<2x32xf32>
    %252 = vector.broadcast %3 : vector<1x32xf32> to vector<2x32xf32>
    %253 = arith.addf %251, %252 : vector<2x32xf32>
    %254 = vector.extract_strided_slice %248 {offsets = [0, 0], sizes = [2, 64], strides = [1, 1]} : vector<2x96xf32> to vector<2x64xf32>
    %255 = vector.extract_strided_slice %250 {offsets = [0, 0], sizes = [2, 64], strides = [1, 1]} : vector<2x96xf32> to vector<2x64xf32>
    %256 = arith.addf %254, %255 : vector<2x64xf32>
    %cst_72 = arith.constant 5.000000e-01 : f32
    %257 = vector.broadcast %cst_72 : f32 to vector<2x64xf32>
    %258 = arith.mulf %257, %256 : vector<2x64xf32>
    %259 = math.tanh %258 : vector<2x64xf32>
    %cst_73 = arith.constant 5.000000e-01 : f32
    %260 = vector.broadcast %cst_73 : f32 to vector<2x64xf32>
    %261 = arith.mulf %260, %259 : vector<2x64xf32>
    %cst_74 = arith.constant 5.000000e-01 : f32
    %262 = vector.broadcast %cst_74 : f32 to vector<2x64xf32>
    %263 = arith.addf %261, %262 : vector<2x64xf32>
    %264 = vector.extract_strided_slice %263 {offsets = [0, 0], sizes = [2, 32], strides = [1, 1]} : vector<2x64xf32> to vector<2x32xf32>
    %265 = vector.extract_strided_slice %263 {offsets = [0, 32], sizes = [2, 32], strides = [1, 1]} : vector<2x64xf32> to vector<2x32xf32>
    %266 = vector.extract_strided_slice %248 {offsets = [0, 64], sizes = [2, 32], strides = [1, 1]} : vector<2x96xf32> to vector<2x32xf32>
    %267 = arith.mulf %264, %253 : vector<2x32xf32>
    %268 = arith.addf %266, %267 : vector<2x32xf32>
    %269 = math.tanh %268 : vector<2x32xf32>
    %cst_75 = arith.constant 1.000000e+00 : f32
    %270 = vector.broadcast %cst_75 : f32 to vector<2x32xf32>
    %271 = arith.subf %270, %265 : vector<2x32xf32>
    %272 = arith.mulf %271, %269 : vector<2x32xf32>
    %273 = arith.mulf %265, %245 : vector<2x32xf32>
    %274 = arith.addf %272, %273 : vector<2x32xf32>
    %c9_i32 = arith.constant 9 : i32
    %275 = arith.index_cast %c9_i32 : i32 to index
    %c0_76 = arith.constant 0 : index
    %c0_77 = arith.constant 0 : index
    %276 = vector.load %arg8[%275, %c0_76, %c0_77] : memref<24x2x96xf32, #tpu.memory_space<vmem>>, vector<1x2x96xf32>
    %277 = vector.shape_cast %276 : vector<1x2x96xf32> to vector<2x96xf32>
    %278 = arith.truncf %274 : vector<2x32xf32> to vector<2x32xbf16>
    %cst_78 = arith.constant dense<0.000000e+00> : vector<2x96xf32>
    %279 = tpu.matmul %278, %2, %cst_78 {dimension_numbers = #tpu.dot_dimension_numbers<[1], [0], [0], [1], [0, 0, 1, 1], [], []>} : vector<2x32xbf16>, vector<32x96xbf16>, vector<2x96xf32> -> vector<2x96xf32>
    %280 = vector.extract_strided_slice %279 {offsets = [0, 64], sizes = [2, 32], strides = [1, 1]} : vector<2x96xf32> to vector<2x32xf32>
    %281 = vector.broadcast %3 : vector<1x32xf32> to vector<2x32xf32>
    %282 = arith.addf %280, %281 : vector<2x32xf32>
    %283 = vector.extract_strided_slice %277 {offsets = [0, 0], sizes = [2, 64], strides = [1, 1]} : vector<2x96xf32> to vector<2x64xf32>
    %284 = vector.extract_strided_slice %279 {offsets = [0, 0], sizes = [2, 64], strides = [1, 1]} : vector<2x96xf32> to vector<2x64xf32>
    %285 = arith.addf %283, %284 : vector<2x64xf32>
    %cst_79 = arith.constant 5.000000e-01 : f32
    %286 = vector.broadcast %cst_79 : f32 to vector<2x64xf32>
    %287 = arith.mulf %286, %285 : vector<2x64xf32>
    %288 = math.tanh %287 : vector<2x64xf32>
    %cst_80 = arith.constant 5.000000e-01 : f32
    %289 = vector.broadcast %cst_80 : f32 to vector<2x64xf32>
    %290 = arith.mulf %289, %288 : vector<2x64xf32>
    %cst_81 = arith.constant 5.000000e-01 : f32
    %291 = vector.broadcast %cst_81 : f32 to vector<2x64xf32>
    %292 = arith.addf %290, %291 : vector<2x64xf32>
    %293 = vector.extract_strided_slice %292 {offsets = [0, 0], sizes = [2, 32], strides = [1, 1]} : vector<2x64xf32> to vector<2x32xf32>
    %294 = vector.extract_strided_slice %292 {offsets = [0, 32], sizes = [2, 32], strides = [1, 1]} : vector<2x64xf32> to vector<2x32xf32>
    %295 = vector.extract_strided_slice %277 {offsets = [0, 64], sizes = [2, 32], strides = [1, 1]} : vector<2x96xf32> to vector<2x32xf32>
    %296 = arith.mulf %293, %282 : vector<2x32xf32>
    %297 = arith.addf %295, %296 : vector<2x32xf32>
    %298 = math.tanh %297 : vector<2x32xf32>
    %cst_82 = arith.constant 1.000000e+00 : f32
    %299 = vector.broadcast %cst_82 : f32 to vector<2x32xf32>
    %300 = arith.subf %299, %294 : vector<2x32xf32>
    %301 = arith.mulf %300, %298 : vector<2x32xf32>
    %302 = arith.mulf %294, %274 : vector<2x32xf32>
    %303 = arith.addf %301, %302 : vector<2x32xf32>
    %c10_i32 = arith.constant 10 : i32
    %304 = arith.index_cast %c10_i32 : i32 to index
    %c0_83 = arith.constant 0 : index
    %c0_84 = arith.constant 0 : index
    %305 = vector.load %arg8[%304, %c0_83, %c0_84] : memref<24x2x96xf32, #tpu.memory_space<vmem>>, vector<1x2x96xf32>
    %306 = vector.shape_cast %305 : vector<1x2x96xf32> to vector<2x96xf32>
    %307 = arith.truncf %303 : vector<2x32xf32> to vector<2x32xbf16>
    %cst_85 = arith.constant dense<0.000000e+00> : vector<2x96xf32>
    %308 = tpu.matmul %307, %2, %cst_85 {dimension_numbers = #tpu.dot_dimension_numbers<[1], [0], [0], [1], [0, 0, 1, 1], [], []>} : vector<2x32xbf16>, vector<32x96xbf16>, vector<2x96xf32> -> vector<2x96xf32>
    %309 = vector.extract_strided_slice %308 {offsets = [0, 64], sizes = [2, 32], strides = [1, 1]} : vector<2x96xf32> to vector<2x32xf32>
    %310 = vector.broadcast %3 : vector<1x32xf32> to vector<2x32xf32>
    %311 = arith.addf %309, %310 : vector<2x32xf32>
    %312 = vector.extract_strided_slice %306 {offsets = [0, 0], sizes = [2, 64], strides = [1, 1]} : vector<2x96xf32> to vector<2x64xf32>
    %313 = vector.extract_strided_slice %308 {offsets = [0, 0], sizes = [2, 64], strides = [1, 1]} : vector<2x96xf32> to vector<2x64xf32>
    %314 = arith.addf %312, %313 : vector<2x64xf32>
    %cst_86 = arith.constant 5.000000e-01 : f32
    %315 = vector.broadcast %cst_86 : f32 to vector<2x64xf32>
    %316 = arith.mulf %315, %314 : vector<2x64xf32>
    %317 = math.tanh %316 : vector<2x64xf32>
    %cst_87 = arith.constant 5.000000e-01 : f32
    %318 = vector.broadcast %cst_87 : f32 to vector<2x64xf32>
    %319 = arith.mulf %318, %317 : vector<2x64xf32>
    %cst_88 = arith.constant 5.000000e-01 : f32
    %320 = vector.broadcast %cst_88 : f32 to vector<2x64xf32>
    %321 = arith.addf %319, %320 : vector<2x64xf32>
    %322 = vector.extract_strided_slice %321 {offsets = [0, 0], sizes = [2, 32], strides = [1, 1]} : vector<2x64xf32> to vector<2x32xf32>
    %323 = vector.extract_strided_slice %321 {offsets = [0, 32], sizes = [2, 32], strides = [1, 1]} : vector<2x64xf32> to vector<2x32xf32>
    %324 = vector.extract_strided_slice %306 {offsets = [0, 64], sizes = [2, 32], strides = [1, 1]} : vector<2x96xf32> to vector<2x32xf32>
    %325 = arith.mulf %322, %311 : vector<2x32xf32>
    %326 = arith.addf %324, %325 : vector<2x32xf32>
    %327 = math.tanh %326 : vector<2x32xf32>
    %cst_89 = arith.constant 1.000000e+00 : f32
    %328 = vector.broadcast %cst_89 : f32 to vector<2x32xf32>
    %329 = arith.subf %328, %323 : vector<2x32xf32>
    %330 = arith.mulf %329, %327 : vector<2x32xf32>
    %331 = arith.mulf %323, %303 : vector<2x32xf32>
    %332 = arith.addf %330, %331 : vector<2x32xf32>
    %c11_i32 = arith.constant 11 : i32
    %333 = arith.index_cast %c11_i32 : i32 to index
    %c0_90 = arith.constant 0 : index
    %c0_91 = arith.constant 0 : index
    %334 = vector.load %arg8[%333, %c0_90, %c0_91] : memref<24x2x96xf32, #tpu.memory_space<vmem>>, vector<1x2x96xf32>
    %335 = vector.shape_cast %334 : vector<1x2x96xf32> to vector<2x96xf32>
    %336 = arith.truncf %332 : vector<2x32xf32> to vector<2x32xbf16>
    %cst_92 = arith.constant dense<0.000000e+00> : vector<2x96xf32>
    %337 = tpu.matmul %336, %2, %cst_92 {dimension_numbers = #tpu.dot_dimension_numbers<[1], [0], [0], [1], [0, 0, 1, 1], [], []>} : vector<2x32xbf16>, vector<32x96xbf16>, vector<2x96xf32> -> vector<2x96xf32>
    %338 = vector.extract_strided_slice %337 {offsets = [0, 64], sizes = [2, 32], strides = [1, 1]} : vector<2x96xf32> to vector<2x32xf32>
    %339 = vector.broadcast %3 : vector<1x32xf32> to vector<2x32xf32>
    %340 = arith.addf %338, %339 : vector<2x32xf32>
    %341 = vector.extract_strided_slice %335 {offsets = [0, 0], sizes = [2, 64], strides = [1, 1]} : vector<2x96xf32> to vector<2x64xf32>
    %342 = vector.extract_strided_slice %337 {offsets = [0, 0], sizes = [2, 64], strides = [1, 1]} : vector<2x96xf32> to vector<2x64xf32>
    %343 = arith.addf %341, %342 : vector<2x64xf32>
    %cst_93 = arith.constant 5.000000e-01 : f32
    %344 = vector.broadcast %cst_93 : f32 to vector<2x64xf32>
    %345 = arith.mulf %344, %343 : vector<2x64xf32>
    %346 = math.tanh %345 : vector<2x64xf32>
    %cst_94 = arith.constant 5.000000e-01 : f32
    %347 = vector.broadcast %cst_94 : f32 to vector<2x64xf32>
    %348 = arith.mulf %347, %346 : vector<2x64xf32>
    %cst_95 = arith.constant 5.000000e-01 : f32
    %349 = vector.broadcast %cst_95 : f32 to vector<2x64xf32>
    %350 = arith.addf %348, %349 : vector<2x64xf32>
    %351 = vector.extract_strided_slice %350 {offsets = [0, 0], sizes = [2, 32], strides = [1, 1]} : vector<2x64xf32> to vector<2x32xf32>
    %352 = vector.extract_strided_slice %350 {offsets = [0, 32], sizes = [2, 32], strides = [1, 1]} : vector<2x64xf32> to vector<2x32xf32>
    %353 = vector.extract_strided_slice %335 {offsets = [0, 64], sizes = [2, 32], strides = [1, 1]} : vector<2x96xf32> to vector<2x32xf32>
    %354 = arith.mulf %351, %340 : vector<2x32xf32>
    %355 = arith.addf %353, %354 : vector<2x32xf32>
    %356 = math.tanh %355 : vector<2x32xf32>
    %cst_96 = arith.constant 1.000000e+00 : f32
    %357 = vector.broadcast %cst_96 : f32 to vector<2x32xf32>
    %358 = arith.subf %357, %352 : vector<2x32xf32>
    %359 = arith.mulf %358, %356 : vector<2x32xf32>
    %360 = arith.mulf %352, %332 : vector<2x32xf32>
    %361 = arith.addf %359, %360 : vector<2x32xf32>
    %c12_i32 = arith.constant 12 : i32
    %362 = arith.index_cast %c12_i32 : i32 to index
    %c0_97 = arith.constant 0 : index
    %c0_98 = arith.constant 0 : index
    %363 = vector.load %arg8[%362, %c0_97, %c0_98] : memref<24x2x96xf32, #tpu.memory_space<vmem>>, vector<1x2x96xf32>
    %364 = vector.shape_cast %363 : vector<1x2x96xf32> to vector<2x96xf32>
    %365 = arith.truncf %361 : vector<2x32xf32> to vector<2x32xbf16>
    %cst_99 = arith.constant dense<0.000000e+00> : vector<2x96xf32>
    %366 = tpu.matmul %365, %2, %cst_99 {dimension_numbers = #tpu.dot_dimension_numbers<[1], [0], [0], [1], [0, 0, 1, 1], [], []>} : vector<2x32xbf16>, vector<32x96xbf16>, vector<2x96xf32> -> vector<2x96xf32>
    %367 = vector.extract_strided_slice %366 {offsets = [0, 64], sizes = [2, 32], strides = [1, 1]} : vector<2x96xf32> to vector<2x32xf32>
    %368 = vector.broadcast %3 : vector<1x32xf32> to vector<2x32xf32>
    %369 = arith.addf %367, %368 : vector<2x32xf32>
    %370 = vector.extract_strided_slice %364 {offsets = [0, 0], sizes = [2, 64], strides = [1, 1]} : vector<2x96xf32> to vector<2x64xf32>
    %371 = vector.extract_strided_slice %366 {offsets = [0, 0], sizes = [2, 64], strides = [1, 1]} : vector<2x96xf32> to vector<2x64xf32>
    %372 = arith.addf %370, %371 : vector<2x64xf32>
    %cst_100 = arith.constant 5.000000e-01 : f32
    %373 = vector.broadcast %cst_100 : f32 to vector<2x64xf32>
    %374 = arith.mulf %373, %372 : vector<2x64xf32>
    %375 = math.tanh %374 : vector<2x64xf32>
    %cst_101 = arith.constant 5.000000e-01 : f32
    %376 = vector.broadcast %cst_101 : f32 to vector<2x64xf32>
    %377 = arith.mulf %376, %375 : vector<2x64xf32>
    %cst_102 = arith.constant 5.000000e-01 : f32
    %378 = vector.broadcast %cst_102 : f32 to vector<2x64xf32>
    %379 = arith.addf %377, %378 : vector<2x64xf32>
    %380 = vector.extract_strided_slice %379 {offsets = [0, 0], sizes = [2, 32], strides = [1, 1]} : vector<2x64xf32> to vector<2x32xf32>
    %381 = vector.extract_strided_slice %379 {offsets = [0, 32], sizes = [2, 32], strides = [1, 1]} : vector<2x64xf32> to vector<2x32xf32>
    %382 = vector.extract_strided_slice %364 {offsets = [0, 64], sizes = [2, 32], strides = [1, 1]} : vector<2x96xf32> to vector<2x32xf32>
    %383 = arith.mulf %380, %369 : vector<2x32xf32>
    %384 = arith.addf %382, %383 : vector<2x32xf32>
    %385 = math.tanh %384 : vector<2x32xf32>
    %cst_103 = arith.constant 1.000000e+00 : f32
    %386 = vector.broadcast %cst_103 : f32 to vector<2x32xf32>
    %387 = arith.subf %386, %381 : vector<2x32xf32>
    %388 = arith.mulf %387, %385 : vector<2x32xf32>
    %389 = arith.mulf %381, %361 : vector<2x32xf32>
    %390 = arith.addf %388, %389 : vector<2x32xf32>
    %c13_i32 = arith.constant 13 : i32
    %391 = arith.index_cast %c13_i32 : i32 to index
    %c0_104 = arith.constant 0 : index
    %c0_105 = arith.constant 0 : index
    %392 = vector.load %arg8[%391, %c0_104, %c0_105] : memref<24x2x96xf32, #tpu.memory_space<vmem>>, vector<1x2x96xf32>
    %393 = vector.shape_cast %392 : vector<1x2x96xf32> to vector<2x96xf32>
    %394 = arith.truncf %390 : vector<2x32xf32> to vector<2x32xbf16>
    %cst_106 = arith.constant dense<0.000000e+00> : vector<2x96xf32>
    %395 = tpu.matmul %394, %2, %cst_106 {dimension_numbers = #tpu.dot_dimension_numbers<[1], [0], [0], [1], [0, 0, 1, 1], [], []>} : vector<2x32xbf16>, vector<32x96xbf16>, vector<2x96xf32> -> vector<2x96xf32>
    %396 = vector.extract_strided_slice %395 {offsets = [0, 64], sizes = [2, 32], strides = [1, 1]} : vector<2x96xf32> to vector<2x32xf32>
    %397 = vector.broadcast %3 : vector<1x32xf32> to vector<2x32xf32>
    %398 = arith.addf %396, %397 : vector<2x32xf32>
    %399 = vector.extract_strided_slice %393 {offsets = [0, 0], sizes = [2, 64], strides = [1, 1]} : vector<2x96xf32> to vector<2x64xf32>
    %400 = vector.extract_strided_slice %395 {offsets = [0, 0], sizes = [2, 64], strides = [1, 1]} : vector<2x96xf32> to vector<2x64xf32>
    %401 = arith.addf %399, %400 : vector<2x64xf32>
    %cst_107 = arith.constant 5.000000e-01 : f32
    %402 = vector.broadcast %cst_107 : f32 to vector<2x64xf32>
    %403 = arith.mulf %402, %401 : vector<2x64xf32>
    %404 = math.tanh %403 : vector<2x64xf32>
    %cst_108 = arith.constant 5.000000e-01 : f32
    %405 = vector.broadcast %cst_108 : f32 to vector<2x64xf32>
    %406 = arith.mulf %405, %404 : vector<2x64xf32>
    %cst_109 = arith.constant 5.000000e-01 : f32
    %407 = vector.broadcast %cst_109 : f32 to vector<2x64xf32>
    %408 = arith.addf %406, %407 : vector<2x64xf32>
    %409 = vector.extract_strided_slice %408 {offsets = [0, 0], sizes = [2, 32], strides = [1, 1]} : vector<2x64xf32> to vector<2x32xf32>
    %410 = vector.extract_strided_slice %408 {offsets = [0, 32], sizes = [2, 32], strides = [1, 1]} : vector<2x64xf32> to vector<2x32xf32>
    %411 = vector.extract_strided_slice %393 {offsets = [0, 64], sizes = [2, 32], strides = [1, 1]} : vector<2x96xf32> to vector<2x32xf32>
    %412 = arith.mulf %409, %398 : vector<2x32xf32>
    %413 = arith.addf %411, %412 : vector<2x32xf32>
    %414 = math.tanh %413 : vector<2x32xf32>
    %cst_110 = arith.constant 1.000000e+00 : f32
    %415 = vector.broadcast %cst_110 : f32 to vector<2x32xf32>
    %416 = arith.subf %415, %410 : vector<2x32xf32>
    %417 = arith.mulf %416, %414 : vector<2x32xf32>
    %418 = arith.mulf %410, %390 : vector<2x32xf32>
    %419 = arith.addf %417, %418 : vector<2x32xf32>
    %c14_i32 = arith.constant 14 : i32
    %420 = arith.index_cast %c14_i32 : i32 to index
    %c0_111 = arith.constant 0 : index
    %c0_112 = arith.constant 0 : index
    %421 = vector.load %arg8[%420, %c0_111, %c0_112] : memref<24x2x96xf32, #tpu.memory_space<vmem>>, vector<1x2x96xf32>
    %422 = vector.shape_cast %421 : vector<1x2x96xf32> to vector<2x96xf32>
    %423 = arith.truncf %419 : vector<2x32xf32> to vector<2x32xbf16>
    %cst_113 = arith.constant dense<0.000000e+00> : vector<2x96xf32>
    %424 = tpu.matmul %423, %2, %cst_113 {dimension_numbers = #tpu.dot_dimension_numbers<[1], [0], [0], [1], [0, 0, 1, 1], [], []>} : vector<2x32xbf16>, vector<32x96xbf16>, vector<2x96xf32> -> vector<2x96xf32>
    %425 = vector.extract_strided_slice %424 {offsets = [0, 64], sizes = [2, 32], strides = [1, 1]} : vector<2x96xf32> to vector<2x32xf32>
    %426 = vector.broadcast %3 : vector<1x32xf32> to vector<2x32xf32>
    %427 = arith.addf %425, %426 : vector<2x32xf32>
    %428 = vector.extract_strided_slice %422 {offsets = [0, 0], sizes = [2, 64], strides = [1, 1]} : vector<2x96xf32> to vector<2x64xf32>
    %429 = vector.extract_strided_slice %424 {offsets = [0, 0], sizes = [2, 64], strides = [1, 1]} : vector<2x96xf32> to vector<2x64xf32>
    %430 = arith.addf %428, %429 : vector<2x64xf32>
    %cst_114 = arith.constant 5.000000e-01 : f32
    %431 = vector.broadcast %cst_114 : f32 to vector<2x64xf32>
    %432 = arith.mulf %431, %430 : vector<2x64xf32>
    %433 = math.tanh %432 : vector<2x64xf32>
    %cst_115 = arith.constant 5.000000e-01 : f32
    %434 = vector.broadcast %cst_115 : f32 to vector<2x64xf32>
    %435 = arith.mulf %434, %433 : vector<2x64xf32>
    %cst_116 = arith.constant 5.000000e-01 : f32
    %436 = vector.broadcast %cst_116 : f32 to vector<2x64xf32>
    %437 = arith.addf %435, %436 : vector<2x64xf32>
    %438 = vector.extract_strided_slice %437 {offsets = [0, 0], sizes = [2, 32], strides = [1, 1]} : vector<2x64xf32> to vector<2x32xf32>
    %439 = vector.extract_strided_slice %437 {offsets = [0, 32], sizes = [2, 32], strides = [1, 1]} : vector<2x64xf32> to vector<2x32xf32>
    %440 = vector.extract_strided_slice %422 {offsets = [0, 64], sizes = [2, 32], strides = [1, 1]} : vector<2x96xf32> to vector<2x32xf32>
    %441 = arith.mulf %438, %427 : vector<2x32xf32>
    %442 = arith.addf %440, %441 : vector<2x32xf32>
    %443 = math.tanh %442 : vector<2x32xf32>
    %cst_117 = arith.constant 1.000000e+00 : f32
    %444 = vector.broadcast %cst_117 : f32 to vector<2x32xf32>
    %445 = arith.subf %444, %439 : vector<2x32xf32>
    %446 = arith.mulf %445, %443 : vector<2x32xf32>
    %447 = arith.mulf %439, %419 : vector<2x32xf32>
    %448 = arith.addf %446, %447 : vector<2x32xf32>
    %c15_i32 = arith.constant 15 : i32
    %449 = arith.index_cast %c15_i32 : i32 to index
    %c0_118 = arith.constant 0 : index
    %c0_119 = arith.constant 0 : index
    %450 = vector.load %arg8[%449, %c0_118, %c0_119] : memref<24x2x96xf32, #tpu.memory_space<vmem>>, vector<1x2x96xf32>
    %451 = vector.shape_cast %450 : vector<1x2x96xf32> to vector<2x96xf32>
    %452 = arith.truncf %448 : vector<2x32xf32> to vector<2x32xbf16>
    %cst_120 = arith.constant dense<0.000000e+00> : vector<2x96xf32>
    %453 = tpu.matmul %452, %2, %cst_120 {dimension_numbers = #tpu.dot_dimension_numbers<[1], [0], [0], [1], [0, 0, 1, 1], [], []>} : vector<2x32xbf16>, vector<32x96xbf16>, vector<2x96xf32> -> vector<2x96xf32>
    %454 = vector.extract_strided_slice %453 {offsets = [0, 64], sizes = [2, 32], strides = [1, 1]} : vector<2x96xf32> to vector<2x32xf32>
    %455 = vector.broadcast %3 : vector<1x32xf32> to vector<2x32xf32>
    %456 = arith.addf %454, %455 : vector<2x32xf32>
    %457 = vector.extract_strided_slice %451 {offsets = [0, 0], sizes = [2, 64], strides = [1, 1]} : vector<2x96xf32> to vector<2x64xf32>
    %458 = vector.extract_strided_slice %453 {offsets = [0, 0], sizes = [2, 64], strides = [1, 1]} : vector<2x96xf32> to vector<2x64xf32>
    %459 = arith.addf %457, %458 : vector<2x64xf32>
    %cst_121 = arith.constant 5.000000e-01 : f32
    %460 = vector.broadcast %cst_121 : f32 to vector<2x64xf32>
    %461 = arith.mulf %460, %459 : vector<2x64xf32>
    %462 = math.tanh %461 : vector<2x64xf32>
    %cst_122 = arith.constant 5.000000e-01 : f32
    %463 = vector.broadcast %cst_122 : f32 to vector<2x64xf32>
    %464 = arith.mulf %463, %462 : vector<2x64xf32>
    %cst_123 = arith.constant 5.000000e-01 : f32
    %465 = vector.broadcast %cst_123 : f32 to vector<2x64xf32>
    %466 = arith.addf %464, %465 : vector<2x64xf32>
    %467 = vector.extract_strided_slice %466 {offsets = [0, 0], sizes = [2, 32], strides = [1, 1]} : vector<2x64xf32> to vector<2x32xf32>
    %468 = vector.extract_strided_slice %466 {offsets = [0, 32], sizes = [2, 32], strides = [1, 1]} : vector<2x64xf32> to vector<2x32xf32>
    %469 = vector.extract_strided_slice %451 {offsets = [0, 64], sizes = [2, 32], strides = [1, 1]} : vector<2x96xf32> to vector<2x32xf32>
    %470 = arith.mulf %467, %456 : vector<2x32xf32>
    %471 = arith.addf %469, %470 : vector<2x32xf32>
    %472 = math.tanh %471 : vector<2x32xf32>
    %cst_124 = arith.constant 1.000000e+00 : f32
    %473 = vector.broadcast %cst_124 : f32 to vector<2x32xf32>
    %474 = arith.subf %473, %468 : vector<2x32xf32>
    %475 = arith.mulf %474, %472 : vector<2x32xf32>
    %476 = arith.mulf %468, %448 : vector<2x32xf32>
    %477 = arith.addf %475, %476 : vector<2x32xf32>
    %c16_i32 = arith.constant 16 : i32
    %478 = arith.index_cast %c16_i32 : i32 to index
    %c0_125 = arith.constant 0 : index
    %c0_126 = arith.constant 0 : index
    %479 = vector.load %arg8[%478, %c0_125, %c0_126] : memref<24x2x96xf32, #tpu.memory_space<vmem>>, vector<1x2x96xf32>
    %480 = vector.shape_cast %479 : vector<1x2x96xf32> to vector<2x96xf32>
    %481 = arith.truncf %477 : vector<2x32xf32> to vector<2x32xbf16>
    %cst_127 = arith.constant dense<0.000000e+00> : vector<2x96xf32>
    %482 = tpu.matmul %481, %2, %cst_127 {dimension_numbers = #tpu.dot_dimension_numbers<[1], [0], [0], [1], [0, 0, 1, 1], [], []>} : vector<2x32xbf16>, vector<32x96xbf16>, vector<2x96xf32> -> vector<2x96xf32>
    %483 = vector.extract_strided_slice %482 {offsets = [0, 64], sizes = [2, 32], strides = [1, 1]} : vector<2x96xf32> to vector<2x32xf32>
    %484 = vector.broadcast %3 : vector<1x32xf32> to vector<2x32xf32>
    %485 = arith.addf %483, %484 : vector<2x32xf32>
    %486 = vector.extract_strided_slice %480 {offsets = [0, 0], sizes = [2, 64], strides = [1, 1]} : vector<2x96xf32> to vector<2x64xf32>
    %487 = vector.extract_strided_slice %482 {offsets = [0, 0], sizes = [2, 64], strides = [1, 1]} : vector<2x96xf32> to vector<2x64xf32>
    %488 = arith.addf %486, %487 : vector<2x64xf32>
    %cst_128 = arith.constant 5.000000e-01 : f32
    %489 = vector.broadcast %cst_128 : f32 to vector<2x64xf32>
    %490 = arith.mulf %489, %488 : vector<2x64xf32>
    %491 = math.tanh %490 : vector<2x64xf32>
    %cst_129 = arith.constant 5.000000e-01 : f32
    %492 = vector.broadcast %cst_129 : f32 to vector<2x64xf32>
    %493 = arith.mulf %492, %491 : vector<2x64xf32>
    %cst_130 = arith.constant 5.000000e-01 : f32
    %494 = vector.broadcast %cst_130 : f32 to vector<2x64xf32>
    %495 = arith.addf %493, %494 : vector<2x64xf32>
    %496 = vector.extract_strided_slice %495 {offsets = [0, 0], sizes = [2, 32], strides = [1, 1]} : vector<2x64xf32> to vector<2x32xf32>
    %497 = vector.extract_strided_slice %495 {offsets = [0, 32], sizes = [2, 32], strides = [1, 1]} : vector<2x64xf32> to vector<2x32xf32>
    %498 = vector.extract_strided_slice %480 {offsets = [0, 64], sizes = [2, 32], strides = [1, 1]} : vector<2x96xf32> to vector<2x32xf32>
    %499 = arith.mulf %496, %485 : vector<2x32xf32>
    %500 = arith.addf %498, %499 : vector<2x32xf32>
    %501 = math.tanh %500 : vector<2x32xf32>
    %cst_131 = arith.constant 1.000000e+00 : f32
    %502 = vector.broadcast %cst_131 : f32 to vector<2x32xf32>
    %503 = arith.subf %502, %497 : vector<2x32xf32>
    %504 = arith.mulf %503, %501 : vector<2x32xf32>
    %505 = arith.mulf %497, %477 : vector<2x32xf32>
    %506 = arith.addf %504, %505 : vector<2x32xf32>
    %c17_i32 = arith.constant 17 : i32
    %507 = arith.index_cast %c17_i32 : i32 to index
    %c0_132 = arith.constant 0 : index
    %c0_133 = arith.constant 0 : index
    %508 = vector.load %arg8[%507, %c0_132, %c0_133] : memref<24x2x96xf32, #tpu.memory_space<vmem>>, vector<1x2x96xf32>
    %509 = vector.shape_cast %508 : vector<1x2x96xf32> to vector<2x96xf32>
    %510 = arith.truncf %506 : vector<2x32xf32> to vector<2x32xbf16>
    %cst_134 = arith.constant dense<0.000000e+00> : vector<2x96xf32>
    %511 = tpu.matmul %510, %2, %cst_134 {dimension_numbers = #tpu.dot_dimension_numbers<[1], [0], [0], [1], [0, 0, 1, 1], [], []>} : vector<2x32xbf16>, vector<32x96xbf16>, vector<2x96xf32> -> vector<2x96xf32>
    %512 = vector.extract_strided_slice %511 {offsets = [0, 64], sizes = [2, 32], strides = [1, 1]} : vector<2x96xf32> to vector<2x32xf32>
    %513 = vector.broadcast %3 : vector<1x32xf32> to vector<2x32xf32>
    %514 = arith.addf %512, %513 : vector<2x32xf32>
    %515 = vector.extract_strided_slice %509 {offsets = [0, 0], sizes = [2, 64], strides = [1, 1]} : vector<2x96xf32> to vector<2x64xf32>
    %516 = vector.extract_strided_slice %511 {offsets = [0, 0], sizes = [2, 64], strides = [1, 1]} : vector<2x96xf32> to vector<2x64xf32>
    %517 = arith.addf %515, %516 : vector<2x64xf32>
    %cst_135 = arith.constant 5.000000e-01 : f32
    %518 = vector.broadcast %cst_135 : f32 to vector<2x64xf32>
    %519 = arith.mulf %518, %517 : vector<2x64xf32>
    %520 = math.tanh %519 : vector<2x64xf32>
    %cst_136 = arith.constant 5.000000e-01 : f32
    %521 = vector.broadcast %cst_136 : f32 to vector<2x64xf32>
    %522 = arith.mulf %521, %520 : vector<2x64xf32>
    %cst_137 = arith.constant 5.000000e-01 : f32
    %523 = vector.broadcast %cst_137 : f32 to vector<2x64xf32>
    %524 = arith.addf %522, %523 : vector<2x64xf32>
    %525 = vector.extract_strided_slice %524 {offsets = [0, 0], sizes = [2, 32], strides = [1, 1]} : vector<2x64xf32> to vector<2x32xf32>
    %526 = vector.extract_strided_slice %524 {offsets = [0, 32], sizes = [2, 32], strides = [1, 1]} : vector<2x64xf32> to vector<2x32xf32>
    %527 = vector.extract_strided_slice %509 {offsets = [0, 64], sizes = [2, 32], strides = [1, 1]} : vector<2x96xf32> to vector<2x32xf32>
    %528 = arith.mulf %525, %514 : vector<2x32xf32>
    %529 = arith.addf %527, %528 : vector<2x32xf32>
    %530 = math.tanh %529 : vector<2x32xf32>
    %cst_138 = arith.constant 1.000000e+00 : f32
    %531 = vector.broadcast %cst_138 : f32 to vector<2x32xf32>
    %532 = arith.subf %531, %526 : vector<2x32xf32>
    %533 = arith.mulf %532, %530 : vector<2x32xf32>
    %534 = arith.mulf %526, %506 : vector<2x32xf32>
    %535 = arith.addf %533, %534 : vector<2x32xf32>
    %c18_i32 = arith.constant 18 : i32
    %536 = arith.index_cast %c18_i32 : i32 to index
    %c0_139 = arith.constant 0 : index
    %c0_140 = arith.constant 0 : index
    %537 = vector.load %arg8[%536, %c0_139, %c0_140] : memref<24x2x96xf32, #tpu.memory_space<vmem>>, vector<1x2x96xf32>
    %538 = vector.shape_cast %537 : vector<1x2x96xf32> to vector<2x96xf32>
    %539 = arith.truncf %535 : vector<2x32xf32> to vector<2x32xbf16>
    %cst_141 = arith.constant dense<0.000000e+00> : vector<2x96xf32>
    %540 = tpu.matmul %539, %2, %cst_141 {dimension_numbers = #tpu.dot_dimension_numbers<[1], [0], [0], [1], [0, 0, 1, 1], [], []>} : vector<2x32xbf16>, vector<32x96xbf16>, vector<2x96xf32> -> vector<2x96xf32>
    %541 = vector.extract_strided_slice %540 {offsets = [0, 64], sizes = [2, 32], strides = [1, 1]} : vector<2x96xf32> to vector<2x32xf32>
    %542 = vector.broadcast %3 : vector<1x32xf32> to vector<2x32xf32>
    %543 = arith.addf %541, %542 : vector<2x32xf32>
    %544 = vector.extract_strided_slice %538 {offsets = [0, 0], sizes = [2, 64], strides = [1, 1]} : vector<2x96xf32> to vector<2x64xf32>
    %545 = vector.extract_strided_slice %540 {offsets = [0, 0], sizes = [2, 64], strides = [1, 1]} : vector<2x96xf32> to vector<2x64xf32>
    %546 = arith.addf %544, %545 : vector<2x64xf32>
    %cst_142 = arith.constant 5.000000e-01 : f32
    %547 = vector.broadcast %cst_142 : f32 to vector<2x64xf32>
    %548 = arith.mulf %547, %546 : vector<2x64xf32>
    %549 = math.tanh %548 : vector<2x64xf32>
    %cst_143 = arith.constant 5.000000e-01 : f32
    %550 = vector.broadcast %cst_143 : f32 to vector<2x64xf32>
    %551 = arith.mulf %550, %549 : vector<2x64xf32>
    %cst_144 = arith.constant 5.000000e-01 : f32
    %552 = vector.broadcast %cst_144 : f32 to vector<2x64xf32>
    %553 = arith.addf %551, %552 : vector<2x64xf32>
    %554 = vector.extract_strided_slice %553 {offsets = [0, 0], sizes = [2, 32], strides = [1, 1]} : vector<2x64xf32> to vector<2x32xf32>
    %555 = vector.extract_strided_slice %553 {offsets = [0, 32], sizes = [2, 32], strides = [1, 1]} : vector<2x64xf32> to vector<2x32xf32>
    %556 = vector.extract_strided_slice %538 {offsets = [0, 64], sizes = [2, 32], strides = [1, 1]} : vector<2x96xf32> to vector<2x32xf32>
    %557 = arith.mulf %554, %543 : vector<2x32xf32>
    %558 = arith.addf %556, %557 : vector<2x32xf32>
    %559 = math.tanh %558 : vector<2x32xf32>
    %cst_145 = arith.constant 1.000000e+00 : f32
    %560 = vector.broadcast %cst_145 : f32 to vector<2x32xf32>
    %561 = arith.subf %560, %555 : vector<2x32xf32>
    %562 = arith.mulf %561, %559 : vector<2x32xf32>
    %563 = arith.mulf %555, %535 : vector<2x32xf32>
    %564 = arith.addf %562, %563 : vector<2x32xf32>
    %c19_i32 = arith.constant 19 : i32
    %565 = arith.index_cast %c19_i32 : i32 to index
    %c0_146 = arith.constant 0 : index
    %c0_147 = arith.constant 0 : index
    %566 = vector.load %arg8[%565, %c0_146, %c0_147] : memref<24x2x96xf32, #tpu.memory_space<vmem>>, vector<1x2x96xf32>
    %567 = vector.shape_cast %566 : vector<1x2x96xf32> to vector<2x96xf32>
    %568 = arith.truncf %564 : vector<2x32xf32> to vector<2x32xbf16>
    %cst_148 = arith.constant dense<0.000000e+00> : vector<2x96xf32>
    %569 = tpu.matmul %568, %2, %cst_148 {dimension_numbers = #tpu.dot_dimension_numbers<[1], [0], [0], [1], [0, 0, 1, 1], [], []>} : vector<2x32xbf16>, vector<32x96xbf16>, vector<2x96xf32> -> vector<2x96xf32>
    %570 = vector.extract_strided_slice %569 {offsets = [0, 64], sizes = [2, 32], strides = [1, 1]} : vector<2x96xf32> to vector<2x32xf32>
    %571 = vector.broadcast %3 : vector<1x32xf32> to vector<2x32xf32>
    %572 = arith.addf %570, %571 : vector<2x32xf32>
    %573 = vector.extract_strided_slice %567 {offsets = [0, 0], sizes = [2, 64], strides = [1, 1]} : vector<2x96xf32> to vector<2x64xf32>
    %574 = vector.extract_strided_slice %569 {offsets = [0, 0], sizes = [2, 64], strides = [1, 1]} : vector<2x96xf32> to vector<2x64xf32>
    %575 = arith.addf %573, %574 : vector<2x64xf32>
    %cst_149 = arith.constant 5.000000e-01 : f32
    %576 = vector.broadcast %cst_149 : f32 to vector<2x64xf32>
    %577 = arith.mulf %576, %575 : vector<2x64xf32>
    %578 = math.tanh %577 : vector<2x64xf32>
    %cst_150 = arith.constant 5.000000e-01 : f32
    %579 = vector.broadcast %cst_150 : f32 to vector<2x64xf32>
    %580 = arith.mulf %579, %578 : vector<2x64xf32>
    %cst_151 = arith.constant 5.000000e-01 : f32
    %581 = vector.broadcast %cst_151 : f32 to vector<2x64xf32>
    %582 = arith.addf %580, %581 : vector<2x64xf32>
    %583 = vector.extract_strided_slice %582 {offsets = [0, 0], sizes = [2, 32], strides = [1, 1]} : vector<2x64xf32> to vector<2x32xf32>
    %584 = vector.extract_strided_slice %582 {offsets = [0, 32], sizes = [2, 32], strides = [1, 1]} : vector<2x64xf32> to vector<2x32xf32>
    %585 = vector.extract_strided_slice %567 {offsets = [0, 64], sizes = [2, 32], strides = [1, 1]} : vector<2x96xf32> to vector<2x32xf32>
    %586 = arith.mulf %583, %572 : vector<2x32xf32>
    %587 = arith.addf %585, %586 : vector<2x32xf32>
    %588 = math.tanh %587 : vector<2x32xf32>
    %cst_152 = arith.constant 1.000000e+00 : f32
    %589 = vector.broadcast %cst_152 : f32 to vector<2x32xf32>
    %590 = arith.subf %589, %584 : vector<2x32xf32>
    %591 = arith.mulf %590, %588 : vector<2x32xf32>
    %592 = arith.mulf %584, %564 : vector<2x32xf32>
    %593 = arith.addf %591, %592 : vector<2x32xf32>
    %c20_i32 = arith.constant 20 : i32
    %594 = arith.index_cast %c20_i32 : i32 to index
    %c0_153 = arith.constant 0 : index
    %c0_154 = arith.constant 0 : index
    %595 = vector.load %arg8[%594, %c0_153, %c0_154] : memref<24x2x96xf32, #tpu.memory_space<vmem>>, vector<1x2x96xf32>
    %596 = vector.shape_cast %595 : vector<1x2x96xf32> to vector<2x96xf32>
    %597 = arith.truncf %593 : vector<2x32xf32> to vector<2x32xbf16>
    %cst_155 = arith.constant dense<0.000000e+00> : vector<2x96xf32>
    %598 = tpu.matmul %597, %2, %cst_155 {dimension_numbers = #tpu.dot_dimension_numbers<[1], [0], [0], [1], [0, 0, 1, 1], [], []>} : vector<2x32xbf16>, vector<32x96xbf16>, vector<2x96xf32> -> vector<2x96xf32>
    %599 = vector.extract_strided_slice %598 {offsets = [0, 64], sizes = [2, 32], strides = [1, 1]} : vector<2x96xf32> to vector<2x32xf32>
    %600 = vector.broadcast %3 : vector<1x32xf32> to vector<2x32xf32>
    %601 = arith.addf %599, %600 : vector<2x32xf32>
    %602 = vector.extract_strided_slice %596 {offsets = [0, 0], sizes = [2, 64], strides = [1, 1]} : vector<2x96xf32> to vector<2x64xf32>
    %603 = vector.extract_strided_slice %598 {offsets = [0, 0], sizes = [2, 64], strides = [1, 1]} : vector<2x96xf32> to vector<2x64xf32>
    %604 = arith.addf %602, %603 : vector<2x64xf32>
    %cst_156 = arith.constant 5.000000e-01 : f32
    %605 = vector.broadcast %cst_156 : f32 to vector<2x64xf32>
    %606 = arith.mulf %605, %604 : vector<2x64xf32>
    %607 = math.tanh %606 : vector<2x64xf32>
    %cst_157 = arith.constant 5.000000e-01 : f32
    %608 = vector.broadcast %cst_157 : f32 to vector<2x64xf32>
    %609 = arith.mulf %608, %607 : vector<2x64xf32>
    %cst_158 = arith.constant 5.000000e-01 : f32
    %610 = vector.broadcast %cst_158 : f32 to vector<2x64xf32>
    %611 = arith.addf %609, %610 : vector<2x64xf32>
    %612 = vector.extract_strided_slice %611 {offsets = [0, 0], sizes = [2, 32], strides = [1, 1]} : vector<2x64xf32> to vector<2x32xf32>
    %613 = vector.extract_strided_slice %611 {offsets = [0, 32], sizes = [2, 32], strides = [1, 1]} : vector<2x64xf32> to vector<2x32xf32>
    %614 = vector.extract_strided_slice %596 {offsets = [0, 64], sizes = [2, 32], strides = [1, 1]} : vector<2x96xf32> to vector<2x32xf32>
    %615 = arith.mulf %612, %601 : vector<2x32xf32>
    %616 = arith.addf %614, %615 : vector<2x32xf32>
    %617 = math.tanh %616 : vector<2x32xf32>
    %cst_159 = arith.constant 1.000000e+00 : f32
    %618 = vector.broadcast %cst_159 : f32 to vector<2x32xf32>
    %619 = arith.subf %618, %613 : vector<2x32xf32>
    %620 = arith.mulf %619, %617 : vector<2x32xf32>
    %621 = arith.mulf %613, %593 : vector<2x32xf32>
    %622 = arith.addf %620, %621 : vector<2x32xf32>
    %c21_i32 = arith.constant 21 : i32
    %623 = arith.index_cast %c21_i32 : i32 to index
    %c0_160 = arith.constant 0 : index
    %c0_161 = arith.constant 0 : index
    %624 = vector.load %arg8[%623, %c0_160, %c0_161] : memref<24x2x96xf32, #tpu.memory_space<vmem>>, vector<1x2x96xf32>
    %625 = vector.shape_cast %624 : vector<1x2x96xf32> to vector<2x96xf32>
    %626 = arith.truncf %622 : vector<2x32xf32> to vector<2x32xbf16>
    %cst_162 = arith.constant dense<0.000000e+00> : vector<2x96xf32>
    %627 = tpu.matmul %626, %2, %cst_162 {dimension_numbers = #tpu.dot_dimension_numbers<[1], [0], [0], [1], [0, 0, 1, 1], [], []>} : vector<2x32xbf16>, vector<32x96xbf16>, vector<2x96xf32> -> vector<2x96xf32>
    %628 = vector.extract_strided_slice %627 {offsets = [0, 64], sizes = [2, 32], strides = [1, 1]} : vector<2x96xf32> to vector<2x32xf32>
    %629 = vector.broadcast %3 : vector<1x32xf32> to vector<2x32xf32>
    %630 = arith.addf %628, %629 : vector<2x32xf32>
    %631 = vector.extract_strided_slice %625 {offsets = [0, 0], sizes = [2, 64], strides = [1, 1]} : vector<2x96xf32> to vector<2x64xf32>
    %632 = vector.extract_strided_slice %627 {offsets = [0, 0], sizes = [2, 64], strides = [1, 1]} : vector<2x96xf32> to vector<2x64xf32>
    %633 = arith.addf %631, %632 : vector<2x64xf32>
    %cst_163 = arith.constant 5.000000e-01 : f32
    %634 = vector.broadcast %cst_163 : f32 to vector<2x64xf32>
    %635 = arith.mulf %634, %633 : vector<2x64xf32>
    %636 = math.tanh %635 : vector<2x64xf32>
    %cst_164 = arith.constant 5.000000e-01 : f32
    %637 = vector.broadcast %cst_164 : f32 to vector<2x64xf32>
    %638 = arith.mulf %637, %636 : vector<2x64xf32>
    %cst_165 = arith.constant 5.000000e-01 : f32
    %639 = vector.broadcast %cst_165 : f32 to vector<2x64xf32>
    %640 = arith.addf %638, %639 : vector<2x64xf32>
    %641 = vector.extract_strided_slice %640 {offsets = [0, 0], sizes = [2, 32], strides = [1, 1]} : vector<2x64xf32> to vector<2x32xf32>
    %642 = vector.extract_strided_slice %640 {offsets = [0, 32], sizes = [2, 32], strides = [1, 1]} : vector<2x64xf32> to vector<2x32xf32>
    %643 = vector.extract_strided_slice %625 {offsets = [0, 64], sizes = [2, 32], strides = [1, 1]} : vector<2x96xf32> to vector<2x32xf32>
    %644 = arith.mulf %641, %630 : vector<2x32xf32>
    %645 = arith.addf %643, %644 : vector<2x32xf32>
    %646 = math.tanh %645 : vector<2x32xf32>
    %cst_166 = arith.constant 1.000000e+00 : f32
    %647 = vector.broadcast %cst_166 : f32 to vector<2x32xf32>
    %648 = arith.subf %647, %642 : vector<2x32xf32>
    %649 = arith.mulf %648, %646 : vector<2x32xf32>
    %650 = arith.mulf %642, %622 : vector<2x32xf32>
    %651 = arith.addf %649, %650 : vector<2x32xf32>
    %c22_i32 = arith.constant 22 : i32
    %652 = arith.index_cast %c22_i32 : i32 to index
    %c0_167 = arith.constant 0 : index
    %c0_168 = arith.constant 0 : index
    %653 = vector.load %arg8[%652, %c0_167, %c0_168] : memref<24x2x96xf32, #tpu.memory_space<vmem>>, vector<1x2x96xf32>
    %654 = vector.shape_cast %653 : vector<1x2x96xf32> to vector<2x96xf32>
    %655 = arith.truncf %651 : vector<2x32xf32> to vector<2x32xbf16>
    %cst_169 = arith.constant dense<0.000000e+00> : vector<2x96xf32>
    %656 = tpu.matmul %655, %2, %cst_169 {dimension_numbers = #tpu.dot_dimension_numbers<[1], [0], [0], [1], [0, 0, 1, 1], [], []>} : vector<2x32xbf16>, vector<32x96xbf16>, vector<2x96xf32> -> vector<2x96xf32>
    %657 = vector.extract_strided_slice %656 {offsets = [0, 64], sizes = [2, 32], strides = [1, 1]} : vector<2x96xf32> to vector<2x32xf32>
    %658 = vector.broadcast %3 : vector<1x32xf32> to vector<2x32xf32>
    %659 = arith.addf %657, %658 : vector<2x32xf32>
    %660 = vector.extract_strided_slice %654 {offsets = [0, 0], sizes = [2, 64], strides = [1, 1]} : vector<2x96xf32> to vector<2x64xf32>
    %661 = vector.extract_strided_slice %656 {offsets = [0, 0], sizes = [2, 64], strides = [1, 1]} : vector<2x96xf32> to vector<2x64xf32>
    %662 = arith.addf %660, %661 : vector<2x64xf32>
    %cst_170 = arith.constant 5.000000e-01 : f32
    %663 = vector.broadcast %cst_170 : f32 to vector<2x64xf32>
    %664 = arith.mulf %663, %662 : vector<2x64xf32>
    %665 = math.tanh %664 : vector<2x64xf32>
    %cst_171 = arith.constant 5.000000e-01 : f32
    %666 = vector.broadcast %cst_171 : f32 to vector<2x64xf32>
    %667 = arith.mulf %666, %665 : vector<2x64xf32>
    %cst_172 = arith.constant 5.000000e-01 : f32
    %668 = vector.broadcast %cst_172 : f32 to vector<2x64xf32>
    %669 = arith.addf %667, %668 : vector<2x64xf32>
    %670 = vector.extract_strided_slice %669 {offsets = [0, 0], sizes = [2, 32], strides = [1, 1]} : vector<2x64xf32> to vector<2x32xf32>
    %671 = vector.extract_strided_slice %669 {offsets = [0, 32], sizes = [2, 32], strides = [1, 1]} : vector<2x64xf32> to vector<2x32xf32>
    %672 = vector.extract_strided_slice %654 {offsets = [0, 64], sizes = [2, 32], strides = [1, 1]} : vector<2x96xf32> to vector<2x32xf32>
    %673 = arith.mulf %670, %659 : vector<2x32xf32>
    %674 = arith.addf %672, %673 : vector<2x32xf32>
    %675 = math.tanh %674 : vector<2x32xf32>
    %cst_173 = arith.constant 1.000000e+00 : f32
    %676 = vector.broadcast %cst_173 : f32 to vector<2x32xf32>
    %677 = arith.subf %676, %671 : vector<2x32xf32>
    %678 = arith.mulf %677, %675 : vector<2x32xf32>
    %679 = arith.mulf %671, %651 : vector<2x32xf32>
    %680 = arith.addf %678, %679 : vector<2x32xf32>
    %c23_i32 = arith.constant 23 : i32
    %681 = arith.index_cast %c23_i32 : i32 to index
    %c0_174 = arith.constant 0 : index
    %c0_175 = arith.constant 0 : index
    %682 = vector.load %arg8[%681, %c0_174, %c0_175] : memref<24x2x96xf32, #tpu.memory_space<vmem>>, vector<1x2x96xf32>
    %683 = vector.shape_cast %682 : vector<1x2x96xf32> to vector<2x96xf32>
    %684 = arith.truncf %680 : vector<2x32xf32> to vector<2x32xbf16>
    %cst_176 = arith.constant dense<0.000000e+00> : vector<2x96xf32>
    %685 = tpu.matmul %684, %2, %cst_176 {dimension_numbers = #tpu.dot_dimension_numbers<[1], [0], [0], [1], [0, 0, 1, 1], [], []>} : vector<2x32xbf16>, vector<32x96xbf16>, vector<2x96xf32> -> vector<2x96xf32>
    %686 = vector.extract_strided_slice %685 {offsets = [0, 64], sizes = [2, 32], strides = [1, 1]} : vector<2x96xf32> to vector<2x32xf32>
    %687 = vector.broadcast %3 : vector<1x32xf32> to vector<2x32xf32>
    %688 = arith.addf %686, %687 : vector<2x32xf32>
    %689 = vector.extract_strided_slice %683 {offsets = [0, 0], sizes = [2, 64], strides = [1, 1]} : vector<2x96xf32> to vector<2x64xf32>
    %690 = vector.extract_strided_slice %685 {offsets = [0, 0], sizes = [2, 64], strides = [1, 1]} : vector<2x96xf32> to vector<2x64xf32>
    %691 = arith.addf %689, %690 : vector<2x64xf32>
    %cst_177 = arith.constant 5.000000e-01 : f32
    %692 = vector.broadcast %cst_177 : f32 to vector<2x64xf32>
    %693 = arith.mulf %692, %691 : vector<2x64xf32>
    %694 = math.tanh %693 : vector<2x64xf32>
    %cst_178 = arith.constant 5.000000e-01 : f32
    %695 = vector.broadcast %cst_178 : f32 to vector<2x64xf32>
    %696 = arith.mulf %695, %694 : vector<2x64xf32>
    %cst_179 = arith.constant 5.000000e-01 : f32
    %697 = vector.broadcast %cst_179 : f32 to vector<2x64xf32>
    %698 = arith.addf %696, %697 : vector<2x64xf32>
    %699 = vector.extract_strided_slice %698 {offsets = [0, 0], sizes = [2, 32], strides = [1, 1]} : vector<2x64xf32> to vector<2x32xf32>
    %700 = vector.extract_strided_slice %698 {offsets = [0, 32], sizes = [2, 32], strides = [1, 1]} : vector<2x64xf32> to vector<2x32xf32>
    %701 = vector.extract_strided_slice %683 {offsets = [0, 64], sizes = [2, 32], strides = [1, 1]} : vector<2x96xf32> to vector<2x32xf32>
    %702 = arith.mulf %699, %688 : vector<2x32xf32>
    %703 = arith.addf %701, %702 : vector<2x32xf32>
    %704 = math.tanh %703 : vector<2x32xf32>
    %cst_180 = arith.constant 1.000000e+00 : f32
    %705 = vector.broadcast %cst_180 : f32 to vector<2x32xf32>
    %706 = arith.subf %705, %700 : vector<2x32xf32>
    %707 = arith.mulf %706, %704 : vector<2x32xf32>
    %708 = arith.mulf %700, %680 : vector<2x32xf32>
    %709 = arith.addf %707, %708 : vector<2x32xf32>
    %c24_i32 = arith.constant 24 : i32
    %c0_181 = arith.constant 0 : index
    %c0_182 = arith.constant 0 : index
    %710 = vector.load %arg5[%c0_181, %c0_182] : memref<1x32xf32, #tpu.memory_space<vmem>>, vector<1x32xf32>
    %711 = vector.broadcast %710 : vector<1x32xf32> to vector<2x32xf32>
    %712 = arith.mulf %709, %711 : vector<2x32xf32>
    %cst_183 = arith.constant dense<0.000000e+00> : vector<2xf32>
    %713 = vector.multi_reduction <add>, %712, %cst_183 [1] : vector<2x32xf32> to vector<2xf32>
    %714 = vector.shape_cast %713 : vector<2xf32> to vector<2x1xf32>
    %c0_184 = arith.constant 0 : index
    %c0_185 = arith.constant 0 : index
    %715 = vector.load %arg6[%c0_184, %c0_185] : memref<1x1xf32, #tpu.memory_space<vmem>>, vector<1x1xf32>
    %716 = vector.broadcast %715 : vector<1x1xf32> to vector<2x1xf32>
    %717 = arith.addf %714, %716 : vector<2x1xf32>
    %cst_186 = arith.constant 5.000000e-01 : f32
    %718 = vector.broadcast %cst_186 : f32 to vector<2x1xf32>
    %719 = arith.mulf %718, %717 : vector<2x1xf32>
    %720 = math.tanh %719 : vector<2x1xf32>
    %cst_187 = arith.constant 5.000000e-01 : f32
    %721 = vector.broadcast %cst_187 : f32 to vector<2x1xf32>
    %722 = arith.mulf %721, %720 : vector<2x1xf32>
    %cst_188 = arith.constant 5.000000e-01 : f32
    %723 = vector.broadcast %cst_188 : f32 to vector<2x1xf32>
    %724 = arith.addf %722, %723 : vector<2x1xf32>
    %c0_189 = arith.constant 0 : index
    %c0_190 = arith.constant 0 : index
    %725 = vector.load %arg7[%c0_189, %c0_190] : memref<2x1xf32, #tpu.memory_space<vmem>>, vector<2x1xf32>
    tpu.vector_store %arg7[%c0_189, %c0_190], %724 {strides = array<i32>} : memref<2x1xf32, #tpu.memory_space<vmem>>, vector<2x1xf32>,
    return
  }
}

</mosaic_0001>

<bundles_post_ra>
// kernel: tpu_custom_call.1
= control target key start
LH: loop header
LB: loop body
LE: loop exit
PB: predicated region body
PF: predicated region fallthrough
CT: control target
= control target key end

     0   :  { %v2499_v0 = vmov 0.0   ;;  %vm2500_vm0 = vmmov 0   ;;  %v2501_v2 = vmov 0   ;;  %s2502_s30 = smov 64   ;;  %vm240_vm1 = vcmask 779264   ;;  %s2503_s13 = smov 96   ;;  %s3031_s3 = inlined_call_operand.vmem [shape: bf16[32,96], index: 3, kind: input, shape index: {}]   ;;  %s3032_s4 = inlined_call_operand.vmem [shape: f32[1,32], index: 4, kind: input, shape index: {}]   ;;  %s3033_s0 = inlined_call_operand.vmem [shape: f32[24,2,1], index: 0, kind: input, shape index: {}]   ;;  %s3034_s1 = inlined_call_operand.vmem [shape: f32[1,96], index: 1, kind: input, shape index: {}]   ;;  %s3035_s2 = inlined_call_operand.vmem [shape: f32[1,96], index: 2, kind: input, shape index: {}]   ;;  %s3036_s5 = inlined_call_operand.vmem [shape: f32[1,32], index: 5, kind: input, shape index: {}]   ;;  %s3037_s6 = inlined_call_operand.<no memory space> [shape: f32[1,1], index: 6, kind: input, shape index: {}]   ;;  %s3038_s7 = inlined_call_operand.vmem [shape: f32[2,1], index: 7, kind: output, shape index: {}]  }
   0x1   :  { %2195 = vmatprep.subr.bf16.mxu0 %v2499_v0  ;;  %v2549_v1 = vld [vmem:[%s3031_s3 + $0x8] sm:$0xff]   ;;  %2199 = vmatprep.mubr.msk.bf16.mxu0 %vm2500_vm0, %v2499_v0  ;;  %v2558_v3 = vld [vmem:[%s3031_s3] sm:$0xff]   ;;  %vm278_vm2 = vcmask 261120   ;;  %s2504_s21 = smov 32   ;;  %vm2071_vm3 = vcmask 254976   ;;  %vm2087_vm4 = vcmask 1024  }
   0x2   :  { %2393 = vset.pattern.permute.xlu0 %v2501_v2  ;;  %2203 = vmatprep.subr.bf16.mxu1 %v2499_v0  ;;  %v2097_v4 = vld [vmem:[%s3032_s4] ss:$0 sm:$0xff]  ;;  %v37_v28 = vld [vmem:[%s3033_s0 + $0x2] sm:$0x3]  ;;  %v38_v55 = vld [vmem:[%s3033_s0 + $0x4] sm:$0x3] }
   0x3   :  { %2196 = vmatpush3.bf16.msra.mxu0 %v2549_v1  ;;  %2204 = vmatpush3.bf16.msra.mxu1 %v2549_v1  ;;  %v36_v5 = vld [vmem:[%s3033_s0] sm:$0x3] }
   0x4   :  { %2197 = vmatprep.subr.bf16.mxu0 %v2499_v0  ;;  %327 = vrot.lane.b32.xlu0 %v2097_v4, %s2502_s30  ;;  %v2587_v7 = vld [vmem:[%s3034_s1] ss:$0 sm:$0xff] }
   0x5   :  { %2205 = vmatprep.subr.bf16.mxu1 %v2499_v0  ;;  %2207 = vmatprep.mubr.msk.bf16.mxu1 %vm2500_vm0, %v2499_v0  ;;  %v2592_v8 = vld [vmem:[%s3035_s2] ss:$0 sm:$0xff] }
   0x6   :  { %2394 = vset.pattern.permute.xlu1 %v2501_v2 }
   0x7   :  { %2198 = vmatpush3.bf16.msra.mxu0 %v2558_v3  ;;  %2206 = vmatpush3.bf16.msra.mxu1 %v2558_v3 }
   0x8   :  { %62 = vperm.xlu0 %2393, %v36_v5   ;;  %2211 = vmatprep.subr.bf16.mxu0 %v2499_v0 }
   0x9   :  { %2219 = vmatprep.subr.bf16.mxu1 %v2499_v0 }
   0xa   :  { %2200 = vmatmul.mubr.bf16.vlgmr.msra.gmra.mxu0 %v2501_v2 }
   0xb   :  { %2212 = vmatpush3.bf16.msra.mxu0 %v2549_v1  ;;  %2215 = vmatprep.mubr.msk.bf16.mxu0 %vm2500_vm0, %v2499_v0 }
   0xc   :  { %2213 = vmatprep.subr.bf16.mxu0 %v2499_v0 }
   0xf   :  { %2214 = vmatpush3.bf16.msra.mxu0 %v2558_v3 }
  0x10   :  { %2227 = vmatprep.subr.bf16.mxu0 %v2499_v0 }
  0x76   :  { %v2582_v6 = vpop.permute.xlu0 %327 }
  0x83   :  { %v63_v9 = vpop.permute.xlu0 %62 }
  0x84   :  { %v186_v10 = vmul.f32 %v2587_v7, %v63_v9 }
  0x86   :  { %v216_v11 = vadd.f32 %v2592_v8, %v186_v10 }
  0x88   :  { %241 = vst.msk [vmem:[#allocation2] sm:$0x3] %vm240_vm1, %v216_v11 }
  0x8f   :  { %v265_v17 = vld [vmem:[#allocation2] sm:$0x3] }
  0xca   :  { %v316_v12 = vpop.f32.mrf.mxu0 }
  0xcb   :  { %v330_v13 = vadd.f32 %v2582_v6, %v316_v12  ;;  %v331_v18 = vadd.f32 %v316_v12, %v265_v17 }
  0xcc   :  { %v2201_v14 = vpop.f32.mrf.mxu0 }
  0xcd   :  { %337 = vrot.lane.b32.xlu1 %v330_v13, %s2502_s30  ;;  %v332_v19 = vmul.f32 0.5, %v331_v18 }
  0xce   :  { %v319_v15 = vpop.f32.mrf.mxu0 }
  0xcf   :  { %2397 = vtanh.f32 %v332_v19 }
  0xd0   :  { %v2202_v16 = vpop.f32.mrf.mxu0 }
  0xdc   :  { %v2398_v20 = vpop.eup %2397 }
  0xdd   :  { %v334_v21 = vmul.f32 0.5, %v2398_v20 }
  0xdf   :  { %v335_v22 = vadd.f32 0.5, %v334_v21 }
  0xe1   :  { %v347_v29 = vsub.f32 1.0, %v335_v22  ;;  %v353_v31 = vmul.f32 0.0, %v335_v22 }
 0x13f   :  { %v338_v23 = vpop.permute.xlu1 %337 }
 0x140   :  { %v340_v24 = vmul.f32 %v338_v23, %v335_v22 }
 0x142   :  { %342 = vrot.lane.b32.xlu1 %v340_v24, %s2502_s30  ;;  %v39_v24 = vld [vmem:[%s3033_s0 + $0x6] sm:$0x3] }
 0x1b4   :  { %v343_v25 = vpop.permute.xlu1 %342 }
 0x1b5   :  { %v345_v26 = vadd.f32 %v343_v25, %v265_v17 }
 0x1b7   :  { %2399 = vtanh.f32 %v345_v26 }
 0x1c4   :  { %v2400_v27 = vpop.eup %2399 }
 0x1c5   :  { %349 = vrot.lane.b32.xlu1 %v2400_v27, %s2503_s13 }
 0x1c9   :  { %67 = vperm.xlu1 %2394, %v37_v28  }
 0x237   :  { %v350_v30 = vpop.permute.xlu1 %349 }
 0x238   :  { %v352_v32 = vmul.f32 %v350_v30, %v347_v29 }
 0x23a   :  { %v354_v33 = vadd.f32 %v353_v31, %v352_v32 }
 0x23c   :  { %v357_v34 = vpack.c.bf16 %v354_v33, %v354_v33 }
 0x23e   :  { %359 = vrot.lane.b32.xlu0 %v357_v34, %s2503_s13 }
 0x244   :  { %v68_v35 = vpop.permute.xlu1 %67 }
 0x245   :  { %v187_v36 = vmul.f32 %v2587_v7, %v68_v35 }
 0x247   :  { %v217_v38 = vadd.f32 %v2592_v8, %v187_v36 }
 0x249   :  { %242 = vst.msk [vmem:[#allocation2 + $0x2] sm:$0x3] %vm240_vm1, %v217_v38 }
 0x250   :  { %v356_v44 = vld [vmem:[#allocation2 + $0x2] sm:$0x3] }
 0x2b0   :  { %v360_v37 = vpop.permute.xlu0 %359 }
 0x2b1   :  { %2208 = vmatmul.mubr.msk.bf16.vlgmr.msra.gmra.mxu1 %vm278_vm2, %v360_v37 }
 0x2b2   :  { %2220 = vmatpush3.bf16.msra.mxu1 %v2549_v1  ;;  %2223 = vmatprep.mubr.msk.bf16.mxu1 %vm2500_vm0, %v2499_v0 }
 0x2b3   :  { %2221 = vmatprep.subr.bf16.mxu1 %v2499_v0 }
 0x2b6   :  { %2222 = vmatpush3.bf16.msra.mxu1 %v2558_v3 }
 0x2b7   :  { %2235 = vmatprep.subr.bf16.mxu1 %v2499_v0 }
 0x371   :  { %v398_v39 = vpop.f32.mrf.mxu1 }
 0x372   :  { %v404_v40 = vadd.f32 %v398_v39, %v2582_v6  ;;  %v405_v45 = vadd.f32 %v398_v39, %v356_v44 }
 0x373   :  { %v2209_v41 = vpop.f32.mrf.mxu1 }
 0x374   :  { %411 = vrot.lane.b32.xlu0 %v404_v40, %s2502_s30  ;;  %v406_v46 = vmul.f32 0.5, %v405_v45 }
 0x375   :  { %v401_v42 = vpop.f32.mrf.mxu1 }
 0x376   :  { %2401 = vtanh.f32 %v406_v46 }
 0x377   :  { %v2210_v43 = vpop.f32.mrf.mxu1 }
 0x383   :  { %v2402_v47 = vpop.eup %2401 }
 0x384   :  { %v408_v48 = vmul.f32 0.5, %v2402_v47 }
 0x386   :  { %v409_v49 = vadd.f32 0.5, %v408_v48 }
 0x388   :  { %v421_v56 = vsub.f32 1.0, %v409_v49  ;;  %v427_v58 = vmul.f32 %v409_v49, %v354_v33 }
 0x3e6   :  { %v412_v50 = vpop.permute.xlu0 %411 }
 0x3e7   :  { %v414_v51 = vmul.f32 %v412_v50, %v409_v49 }
 0x3e9   :  { %416 = vrot.lane.b32.xlu1 %v414_v51, %s2502_s30  ;;  %v40_v51 = vld [vmem:[%s3033_s0 + $0x8] sm:$0x3] }
 0x45b   :  { %v417_v52 = vpop.permute.xlu1 %416 }
 0x45c   :  { %v419_v53 = vadd.f32 %v417_v52, %v356_v44 }
 0x45e   :  { %2403 = vtanh.f32 %v419_v53 }
 0x46b   :  { %v2404_v54 = vpop.eup %2403 }
 0x46c   :  { %423 = vrot.lane.b32.xlu0 %v2404_v54, %s2503_s13 }
 0x470   :  { %72 = vperm.xlu0 %2393, %v38_v55  }
 0x4de   :  { %v424_v57 = vpop.permute.xlu0 %423 }
 0x4df   :  { %v426_v59 = vmul.f32 %v424_v57, %v421_v56 }
 0x4e1   :  { %v428_v60 = vadd.f32 %v427_v58, %v426_v59 }
 0x4e3   :  { %v431_v61 = vpack.c.bf16 %v428_v60, %v428_v60 }
 0x4e5   :  { %433 = vrot.lane.b32.xlu1 %v431_v61, %s2503_s13 }
 0x4eb   :  { %v73_v62 = vpop.permute.xlu0 %72 }
 0x4ec   :  { %v188_v63 = vmul.f32 %v2587_v7, %v73_v62 }
 0x4ee   :  { %v218_v2 = vadd.f32 %v2592_v8, %v188_v63 }
 0x4f0   :  { %243 = vst.msk [vmem:[#allocation2 + $0x4] sm:$0x3] %vm240_vm1, %v218_v2 }
 0x4f7   :  { %v430_v13 = vld [vmem:[#allocation2 + $0x4] sm:$0x3] }
 0x557   :  { %v434_v4 = vpop.permute.xlu1 %433 }
 0x558   :  { %2216 = vmatmul.mubr.msk.bf16.vlgmr.msra.gmra.mxu0 %vm278_vm2, %v434_v4 }
 0x559   :  { %2228 = vmatpush3.bf16.msra.mxu0 %v2549_v1  ;;  %2231 = vmatprep.mubr.msk.bf16.mxu0 %vm2500_vm0, %v2499_v0 }
 0x55a   :  { %2229 = vmatprep.subr.bf16.mxu0 %v2499_v0 }
 0x55d   :  { %2230 = vmatpush3.bf16.msra.mxu0 %v2558_v3 }
 0x55e   :  { %2243 = vmatprep.subr.bf16.mxu0 %v2499_v0 }
 0x618   :  { %v472_v5 = vpop.f32.mrf.mxu0 }
 0x619   :  { %v478_v9 = vadd.f32 %v472_v5, %v2582_v6  ;;  %v479_v14 = vadd.f32 %v472_v5, %v430_v13 }
 0x61a   :  { %v2217_v10 = vpop.f32.mrf.mxu0 }
 0x61b   :  { %485 = vrot.lane.b32.xlu1 %v478_v9, %s2502_s30  ;;  %v480_v15 = vmul.f32 0.5, %v479_v14 }
 0x61c   :  { %v475_v11 = vpop.f32.mrf.mxu0 }
 0x61d   :  { %2405 = vtanh.f32 %v480_v15 }
 0x61e   :  { %v2218_v12 = vpop.f32.mrf.mxu0 }
 0x62a   :  { %v2406_v16 = vpop.eup %2405 }
 0x62b   :  { %v482_v17 = vmul.f32 0.5, %v2406_v16 }
 0x62d   :  { %v483_v18 = vadd.f32 0.5, %v482_v17 }
 0x62f   :  { %v495_v25 = vsub.f32 1.0, %v483_v18  ;;  %v501_v27 = vmul.f32 %v483_v18, %v428_v60 }
 0x68d   :  { %v486_v19 = vpop.permute.xlu1 %485 }
 0x68e   :  { %v488_v20 = vmul.f32 %v486_v19, %v483_v18 }
 0x690   :  { %490 = vrot.lane.b32.xlu0 %v488_v20, %s2502_s30  ;;  %v41_v20 = vld [vmem:[%s3033_s0 + $0xa] sm:$0x3] }
 0x702   :  { %v491_v21 = vpop.permute.xlu0 %490 }
 0x703   :  { %v493_v22 = vadd.f32 %v491_v21, %v430_v13 }
 0x705   :  { %2407 = vtanh.f32 %v493_v22 }
 0x712   :  { %v2408_v23 = vpop.eup %2407 }
 0x713   :  { %497 = vrot.lane.b32.xlu1 %v2408_v23, %s2503_s13 }
 0x717   :  { %77 = vperm.xlu1 %2394, %v39_v24  }
 0x785   :  { %v498_v26 = vpop.permute.xlu1 %497 }
 0x786   :  { %v500_v28 = vmul.f32 %v498_v26, %v495_v25 }
 0x788   :  { %v502_v29 = vadd.f32 %v501_v27, %v500_v28 }
 0x78a   :  { %v505_v30 = vpack.c.bf16 %v502_v29, %v502_v29 }
 0x78c   :  { %507 = vrot.lane.b32.xlu0 %v505_v30, %s2503_s13 }
 0x792   :  { %v78_v31 = vpop.permute.xlu1 %77 }
 0x793   :  { %v189_v32 = vmul.f32 %v2587_v7, %v78_v31 }
 0x795   :  { %v219_v33 = vadd.f32 %v2592_v8, %v189_v32 }
 0x797   :  { %244 = vst.msk [vmem:[#allocation2 + $0x6] sm:$0x3] %vm240_vm1, %v219_v33 }
 0x79e   :  { %v504_v40 = vld [vmem:[#allocation2 + $0x6] sm:$0x3] }
 0x7fe   :  { %v508_v34 = vpop.permute.xlu0 %507 }
 0x7ff   :  { %2224 = vmatmul.mubr.msk.bf16.vlgmr.msra.gmra.mxu1 %vm278_vm2, %v508_v34 }
 0x800   :  { %2236 = vmatpush3.bf16.msra.mxu1 %v2549_v1  ;;  %2239 = vmatprep.mubr.msk.bf16.mxu1 %vm2500_vm0, %v2499_v0 }
 0x801   :  { %2237 = vmatprep.subr.bf16.mxu1 %v2499_v0 }
 0x804   :  { %2238 = vmatpush3.bf16.msra.mxu1 %v2558_v3 }
 0x805   :  { %2251 = vmatprep.subr.bf16.mxu1 %v2499_v0 }
 0x8bf   :  { %v546_v35 = vpop.f32.mrf.mxu1 }
 0x8c0   :  { %v552_v36 = vadd.f32 %v546_v35, %v2582_v6  ;;  %v553_v41 = vadd.f32 %v546_v35, %v504_v40 }
 0x8c1   :  { %v2225_v37 = vpop.f32.mrf.mxu1 }
 0x8c2   :  { %559 = vrot.lane.b32.xlu0 %v552_v36, %s2502_s30  ;;  %v554_v42 = vmul.f32 0.5, %v553_v41 }
 0x8c3   :  { %v549_v38 = vpop.f32.mrf.mxu1 }
 0x8c4   :  { %2409 = vtanh.f32 %v554_v42 }
 0x8c5   :  { %v2226_v39 = vpop.f32.mrf.mxu1 }
 0x8d1   :  { %v2410_v43 = vpop.eup %2409 }
 0x8d2   :  { %v556_v44 = vmul.f32 0.5, %v2410_v43 }
 0x8d4   :  { %v557_v45 = vadd.f32 0.5, %v556_v44 }
 0x8d6   :  { %v569_v52 = vsub.f32 1.0, %v557_v45  ;;  %v575_v54 = vmul.f32 %v557_v45, %v502_v29 }
 0x934   :  { %v560_v46 = vpop.permute.xlu0 %559 }
 0x935   :  { %v562_v47 = vmul.f32 %v560_v46, %v557_v45 }
 0x937   :  { %564 = vrot.lane.b32.xlu1 %v562_v47, %s2502_s30  ;;  %v42_v47 = vld [vmem:[%s3033_s0 + $0xc] sm:$0x3] }
 0x9a9   :  { %v565_v48 = vpop.permute.xlu1 %564 }
 0x9aa   :  { %v567_v49 = vadd.f32 %v565_v48, %v504_v40 }
 0x9ac   :  { %2411 = vtanh.f32 %v567_v49 }
 0x9b9   :  { %v2412_v50 = vpop.eup %2411 }
 0x9ba   :  { %571 = vrot.lane.b32.xlu0 %v2412_v50, %s2503_s13 }
 0x9be   :  { %82 = vperm.xlu0 %2393, %v40_v51  }
 0xa2c   :  { %v572_v53 = vpop.permute.xlu0 %571 }
 0xa2d   :  { %v574_v55 = vmul.f32 %v572_v53, %v569_v52 }
 0xa2f   :  { %v576_v56 = vadd.f32 %v575_v54, %v574_v55 }
 0xa31   :  { %v579_v57 = vpack.c.bf16 %v576_v56, %v576_v56 }
 0xa33   :  { %581 = vrot.lane.b32.xlu1 %v579_v57, %s2503_s13 }
 0xa39   :  { %v83_v58 = vpop.permute.xlu0 %82 }
 0xa3a   :  { %v190_v59 = vmul.f32 %v2587_v7, %v83_v58 }
 0xa3c   :  { %v220_v60 = vadd.f32 %v2592_v8, %v190_v59 }
 0xa3e   :  { %245 = vst.msk [vmem:[#allocation2 + $0x8] sm:$0x3] %vm240_vm1, %v220_v60 }
 0xa45   :  { %v578_v9 = vld [vmem:[#allocation2 + $0x8] sm:$0x3] }
 0xaa5   :  { %v582_v61 = vpop.permute.xlu1 %581 }
 0xaa6   :  { %2232 = vmatmul.mubr.msk.bf16.vlgmr.msra.gmra.mxu0 %vm278_vm2, %v582_v61 }
 0xaa7   :  { %2244 = vmatpush3.bf16.msra.mxu0 %v2549_v1  ;;  %2247 = vmatprep.mubr.msk.bf16.mxu0 %vm2500_vm0, %v2499_v0 }
 0xaa8   :  { %2245 = vmatprep.subr.bf16.mxu0 %v2499_v0 }
 0xaab   :  { %2246 = vmatpush3.bf16.msra.mxu0 %v2558_v3 }
 0xaac   :  { %2259 = vmatprep.subr.bf16.mxu0 %v2499_v0 }
 0xb66   :  { %v620_v62 = vpop.f32.mrf.mxu0 }
 0xb67   :  { %v626_v63 = vadd.f32 %v620_v62, %v2582_v6  ;;  %v627_v10 = vadd.f32 %v620_v62, %v578_v9 }
 0xb68   :  { %v2233_v2 = vpop.f32.mrf.mxu0 }
 0xb69   :  { %633 = vrot.lane.b32.xlu1 %v626_v63, %s2502_s30  ;;  %v628_v11 = vmul.f32 0.5, %v627_v10 }
 0xb6a   :  { %v623_v4 = vpop.f32.mrf.mxu0 }
 0xb6b   :  { %2413 = vtanh.f32 %v628_v11 }
 0xb6c   :  { %v2234_v5 = vpop.f32.mrf.mxu0 }
 0xb78   :  { %v2414_v12 = vpop.eup %2413 }
 0xb79   :  { %v630_v13 = vmul.f32 0.5, %v2414_v12 }
 0xb7b   :  { %v631_v14 = vadd.f32 0.5, %v630_v13 }
 0xb7d   :  { %v643_v21 = vsub.f32 1.0, %v631_v14  ;;  %v649_v23 = vmul.f32 %v631_v14, %v576_v56 }
 0xbdb   :  { %v634_v15 = vpop.permute.xlu1 %633 }
 0xbdc   :  { %v636_v16 = vmul.f32 %v634_v15, %v631_v14 }
 0xbde   :  { %638 = vrot.lane.b32.xlu0 %v636_v16, %s2502_s30  ;;  %v43_v16 = vld [vmem:[%s3033_s0 + $0xe] sm:$0x3] }
 0xc50   :  { %v639_v17 = vpop.permute.xlu0 %638 }
 0xc51   :  { %v641_v18 = vadd.f32 %v639_v17, %v578_v9 }
 0xc53   :  { %2415 = vtanh.f32 %v641_v18 }
 0xc60   :  { %v2416_v19 = vpop.eup %2415 }
 0xc61   :  { %645 = vrot.lane.b32.xlu1 %v2416_v19, %s2503_s13 }
 0xc65   :  { %87 = vperm.xlu1 %2394, %v41_v20  }
 0xcd3   :  { %v646_v22 = vpop.permute.xlu1 %645 }
 0xcd4   :  { %v648_v24 = vmul.f32 %v646_v22, %v643_v21 }
 0xcd6   :  { %v650_v25 = vadd.f32 %v649_v23, %v648_v24 }
 0xcd8   :  { %v653_v26 = vpack.c.bf16 %v650_v25, %v650_v25 }
 0xcda   :  { %655 = vrot.lane.b32.xlu0 %v653_v26, %s2503_s13 }
 0xce0   :  { %v88_v27 = vpop.permute.xlu1 %87 }
 0xce1   :  { %v191_v28 = vmul.f32 %v2587_v7, %v88_v27 }
 0xce3   :  { %v221_v29 = vadd.f32 %v2592_v8, %v191_v28 }
 0xce5   :  { %246 = vst.msk [vmem:[#allocation2 + $0xa] sm:$0x3] %vm240_vm1, %v221_v29 }
 0xcec   :  { %v652_v36 = vld [vmem:[#allocation2 + $0xa] sm:$0x3] }
 0xd4c   :  { %v656_v30 = vpop.permute.xlu0 %655 }
 0xd4d   :  { %2240 = vmatmul.mubr.msk.bf16.vlgmr.msra.gmra.mxu1 %vm278_vm2, %v656_v30 }
 0xd4e   :  { %2252 = vmatpush3.bf16.msra.mxu1 %v2549_v1  ;;  %2255 = vmatprep.mubr.msk.bf16.mxu1 %vm2500_vm0, %v2499_v0 }
 0xd4f   :  { %2253 = vmatprep.subr.bf16.mxu1 %v2499_v0 }
 0xd52   :  { %2254 = vmatpush3.bf16.msra.mxu1 %v2558_v3 }
 0xd53   :  { %2267 = vmatprep.subr.bf16.mxu1 %v2499_v0 }
 0xe0d   :  { %v694_v31 = vpop.f32.mrf.mxu1 }
 0xe0e   :  { %v700_v32 = vadd.f32 %v694_v31, %v2582_v6  ;;  %v701_v37 = vadd.f32 %v694_v31, %v652_v36 }
 0xe0f   :  { %v2241_v33 = vpop.f32.mrf.mxu1 }
 0xe10   :  { %707 = vrot.lane.b32.xlu0 %v700_v32, %s2502_s30  ;;  %v702_v38 = vmul.f32 0.5, %v701_v37 }
 0xe11   :  { %v697_v34 = vpop.f32.mrf.mxu1 }
 0xe12   :  { %2417 = vtanh.f32 %v702_v38 }
 0xe13   :  { %v2242_v35 = vpop.f32.mrf.mxu1 }
 0xe1f   :  { %v2418_v39 = vpop.eup %2417 }
 0xe20   :  { %v704_v40 = vmul.f32 0.5, %v2418_v39 }
 0xe22   :  { %v705_v41 = vadd.f32 0.5, %v704_v40 }
 0xe24   :  { %v717_v48 = vsub.f32 1.0, %v705_v41  ;;  %v723_v50 = vmul.f32 %v705_v41, %v650_v25 }
 0xe82   :  { %v708_v42 = vpop.permute.xlu0 %707 }
 0xe83   :  { %v710_v43 = vmul.f32 %v708_v42, %v705_v41 }
 0xe85   :  { %712 = vrot.lane.b32.xlu1 %v710_v43, %s2502_s30  ;;  %v44_v43 = vld [vmem:[%s3033_s0 + $0x10] sm:$0x3] }
 0xef7   :  { %v713_v44 = vpop.permute.xlu1 %712 }
 0xef8   :  { %v715_v45 = vadd.f32 %v713_v44, %v652_v36 }
 0xefa   :  { %2419 = vtanh.f32 %v715_v45 }
 0xf07   :  { %v2420_v46 = vpop.eup %2419 }
 0xf08   :  { %719 = vrot.lane.b32.xlu0 %v2420_v46, %s2503_s13 }
 0xf0c   :  { %92 = vperm.xlu0 %2393, %v42_v47  }
 0xf7a   :  { %v720_v49 = vpop.permute.xlu0 %719 }
 0xf7b   :  { %v722_v51 = vmul.f32 %v720_v49, %v717_v48 }
 0xf7d   :  { %v724_v52 = vadd.f32 %v723_v50, %v722_v51 }
 0xf7f   :  { %v727_v53 = vpack.c.bf16 %v724_v52, %v724_v52 }
 0xf81   :  { %729 = vrot.lane.b32.xlu1 %v727_v53, %s2503_s13 }
 0xf87   :  { %v93_v54 = vpop.permute.xlu0 %92 }
 0xf88   :  { %v192_v55 = vmul.f32 %v2587_v7, %v93_v54 }
 0xf8a   :  { %v222_v56 = vadd.f32 %v2592_v8, %v192_v55 }
 0xf8c   :  { %247 = vst.msk [vmem:[#allocation2 + $0xc] sm:$0x3] %vm240_vm1, %v222_v56 }
 0xf93   :  { %v726_v63 = vld [vmem:[#allocation2 + $0xc] sm:$0x3] }
 0xff3   :  { %v730_v57 = vpop.permute.xlu1 %729 }
 0xff4   :  { %2248 = vmatmul.mubr.msk.bf16.vlgmr.msra.gmra.mxu0 %vm278_vm2, %v730_v57 }
 0xff5   :  { %2260 = vmatpush3.bf16.msra.mxu0 %v2549_v1  ;;  %2263 = vmatprep.mubr.msk.bf16.mxu0 %vm2500_vm0, %v2499_v0 }
 0xff6   :  { %2261 = vmatprep.subr.bf16.mxu0 %v2499_v0 }
 0xff9   :  { %2262 = vmatpush3.bf16.msra.mxu0 %v2558_v3 }
 0xffa   :  { %2275 = vmatprep.subr.bf16.mxu0 %v2499_v0 }
0x10b4   :  { %v768_v58 = vpop.f32.mrf.mxu0 }
0x10b5   :  { %v774_v59 = vadd.f32 %v768_v58, %v2582_v6  ;;  %v775_v2 = vadd.f32 %v768_v58, %v726_v63 }
0x10b6   :  { %v2249_v60 = vpop.f32.mrf.mxu0 }
0x10b7   :  { %781 = vrot.lane.b32.xlu1 %v774_v59, %s2502_s30  ;;  %v776_v4 = vmul.f32 0.5, %v775_v2 }
0x10b8   :  { %v771_v61 = vpop.f32.mrf.mxu0 }
0x10b9   :  { %2421 = vtanh.f32 %v776_v4 }
0x10ba   :  { %v2250_v62 = vpop.f32.mrf.mxu0 }
0x10c6   :  { %v2422_v5 = vpop.eup %2421 }
0x10c7   :  { %v778_v9 = vmul.f32 0.5, %v2422_v5 }
0x10c9   :  { %v779_v10 = vadd.f32 0.5, %v778_v9 }
0x10cb   :  { %v791_v17 = vsub.f32 1.0, %v779_v10  ;;  %v797_v19 = vmul.f32 %v779_v10, %v724_v52 }
0x1129   :  { %v782_v11 = vpop.permute.xlu1 %781 }
0x112a   :  { %v784_v12 = vmul.f32 %v782_v11, %v779_v10 }
0x112c   :  { %786 = vrot.lane.b32.xlu0 %v784_v12, %s2502_s30  ;;  %v45_v12 = vld [vmem:[%s3033_s0 + $0x12] sm:$0x3] }
0x119e   :  { %v787_v13 = vpop.permute.xlu0 %786 }
0x119f   :  { %v789_v14 = vadd.f32 %v787_v13, %v726_v63 }
0x11a1   :  { %2423 = vtanh.f32 %v789_v14 }
0x11ae   :  { %v2424_v15 = vpop.eup %2423 }
0x11af   :  { %793 = vrot.lane.b32.xlu1 %v2424_v15, %s2503_s13 }
0x11b3   :  { %97 = vperm.xlu1 %2394, %v43_v16  }
0x1221   :  { %v794_v18 = vpop.permute.xlu1 %793 }
0x1222   :  { %v796_v20 = vmul.f32 %v794_v18, %v791_v17 }
0x1224   :  { %v798_v21 = vadd.f32 %v797_v19, %v796_v20 }
0x1226   :  { %v801_v22 = vpack.c.bf16 %v798_v21, %v798_v21 }
0x1228   :  { %803 = vrot.lane.b32.xlu0 %v801_v22, %s2503_s13 }
0x122e   :  { %v98_v23 = vpop.permute.xlu1 %97 }
0x122f   :  { %v193_v24 = vmul.f32 %v2587_v7, %v98_v23 }
0x1231   :  { %v223_v25 = vadd.f32 %v2592_v8, %v193_v24 }
0x1233   :  { %248 = vst.msk [vmem:[#allocation2 + $0xe] sm:$0x3] %vm240_vm1, %v223_v25 }
0x123a   :  { %v800_v32 = vld [vmem:[#allocation2 + $0xe] sm:$0x3] }
0x129a   :  { %v804_v26 = vpop.permute.xlu0 %803 }
0x129b   :  { %2256 = vmatmul.mubr.msk.bf16.vlgmr.msra.gmra.mxu1 %vm278_vm2, %v804_v26 }
0x129c   :  { %2268 = vmatpush3.bf16.msra.mxu1 %v2549_v1  ;;  %2271 = vmatprep.mubr.msk.bf16.mxu1 %vm2500_vm0, %v2499_v0 }
0x129d   :  { %2269 = vmatprep.subr.bf16.mxu1 %v2499_v0 }
0x12a0   :  { %2270 = vmatpush3.bf16.msra.mxu1 %v2558_v3 }
0x12a1   :  { %2283 = vmatprep.subr.bf16.mxu1 %v2499_v0 }
0x135b   :  { %v842_v27 = vpop.f32.mrf.mxu1 }
0x135c   :  { %v848_v28 = vadd.f32 %v842_v27, %v2582_v6  ;;  %v849_v33 = vadd.f32 %v842_v27, %v800_v32 }
0x135d   :  { %v2257_v29 = vpop.f32.mrf.mxu1 }
0x135e   :  { %855 = vrot.lane.b32.xlu0 %v848_v28, %s2502_s30  ;;  %v850_v34 = vmul.f32 0.5, %v849_v33 }
0x135f   :  { %v845_v30 = vpop.f32.mrf.mxu1 }
0x1360   :  { %2425 = vtanh.f32 %v850_v34 }
0x1361   :  { %v2258_v31 = vpop.f32.mrf.mxu1 }
0x136d   :  { %v2426_v35 = vpop.eup %2425 }
0x136e   :  { %v852_v36 = vmul.f32 0.5, %v2426_v35 }
0x1370   :  { %v853_v37 = vadd.f32 0.5, %v852_v36 }
0x1372   :  { %v865_v44 = vsub.f32 1.0, %v853_v37  ;;  %v871_v46 = vmul.f32 %v853_v37, %v798_v21 }
0x13d0   :  { %v856_v38 = vpop.permute.xlu0 %855 }
0x13d1   :  { %v858_v39 = vmul.f32 %v856_v38, %v853_v37 }
0x13d3   :  { %860 = vrot.lane.b32.xlu1 %v858_v39, %s2502_s30  ;;  %v46_v39 = vld [vmem:[%s3033_s0 + $0x14] sm:$0x3] }
0x1445   :  { %v861_v40 = vpop.permute.xlu1 %860 }
0x1446   :  { %v863_v41 = vadd.f32 %v861_v40, %v800_v32 }
0x1448   :  { %2427 = vtanh.f32 %v863_v41 }
0x1455   :  { %v2428_v42 = vpop.eup %2427 }
0x1456   :  { %867 = vrot.lane.b32.xlu0 %v2428_v42, %s2503_s13 }
0x145a   :  { %102 = vperm.xlu0 %2393, %v44_v43  }
0x14c8   :  { %v868_v45 = vpop.permute.xlu0 %867 }
0x14c9   :  { %v870_v47 = vmul.f32 %v868_v45, %v865_v44 }
0x14cb   :  { %v872_v48 = vadd.f32 %v871_v46, %v870_v47 }
0x14cd   :  { %v875_v49 = vpack.c.bf16 %v872_v48, %v872_v48 }
0x14cf   :  { %877 = vrot.lane.b32.xlu1 %v875_v49, %s2503_s13 }
0x14d5   :  { %v103_v50 = vpop.permute.xlu0 %102 }
0x14d6   :  { %v194_v51 = vmul.f32 %v2587_v7, %v103_v50 }
0x14d8   :  { %v224_v52 = vadd.f32 %v2592_v8, %v194_v51 }
0x14da   :  { %249 = vst.msk [vmem:[#allocation2 + $0x10] sm:$0x3] %vm240_vm1, %v224_v52 }
0x14e1   :  { %v874_v59 = vld [vmem:[#allocation2 + $0x10] sm:$0x3] }
0x1541   :  { %v878_v53 = vpop.permute.xlu1 %877 }
0x1542   :  { %2264 = vmatmul.mubr.msk.bf16.vlgmr.msra.gmra.mxu0 %vm278_vm2, %v878_v53 }
0x1543   :  { %2276 = vmatpush3.bf16.msra.mxu0 %v2549_v1  ;;  %2279 = vmatprep.mubr.msk.bf16.mxu0 %vm2500_vm0, %v2499_v0 }
0x1544   :  { %2277 = vmatprep.subr.bf16.mxu0 %v2499_v0 }
0x1547   :  { %2278 = vmatpush3.bf16.msra.mxu0 %v2558_v3 }
0x1548   :  { %2291 = vmatprep.subr.bf16.mxu0 %v2499_v0 }
0x1602   :  { %v916_v54 = vpop.f32.mrf.mxu0 }
0x1603   :  { %v922_v55 = vadd.f32 %v916_v54, %v2582_v6  ;;  %v923_v60 = vadd.f32 %v916_v54, %v874_v59 }
0x1604   :  { %v2265_v56 = vpop.f32.mrf.mxu0 }
0x1605   :  { %929 = vrot.lane.b32.xlu1 %v922_v55, %s2502_s30  ;;  %v924_v61 = vmul.f32 0.5, %v923_v60 }
0x1606   :  { %v919_v57 = vpop.f32.mrf.mxu0 }
0x1607   :  { %2429 = vtanh.f32 %v924_v61 }
0x1608   :  { %v2266_v58 = vpop.f32.mrf.mxu0 }
0x1614   :  { %v2430_v62 = vpop.eup %2429 }
0x1615   :  { %v926_v63 = vmul.f32 0.5, %v2430_v62 }
0x1617   :  { %v927_v2 = vadd.f32 0.5, %v926_v63 }
0x1619   :  { %v939_v13 = vsub.f32 1.0, %v927_v2  ;;  %v945_v15 = vmul.f32 %v927_v2, %v872_v48 }
0x1677   :  { %v930_v4 = vpop.permute.xlu1 %929 }
0x1678   :  { %v932_v5 = vmul.f32 %v930_v4, %v927_v2 }
0x167a   :  { %934 = vrot.lane.b32.xlu0 %v932_v5, %s2502_s30  ;;  %v47_v5 = vld [vmem:[%s3033_s0 + $0x16] sm:$0x3] }
0x16ec   :  { %v935_v9 = vpop.permute.xlu0 %934 }
0x16ed   :  { %v937_v10 = vadd.f32 %v935_v9, %v874_v59 }
0x16ef   :  { %2431 = vtanh.f32 %v937_v10 }
0x16fc   :  { %v2432_v11 = vpop.eup %2431 }
0x16fd   :  { %941 = vrot.lane.b32.xlu1 %v2432_v11, %s2503_s13 }
0x1701   :  { %107 = vperm.xlu1 %2394, %v45_v12  }
0x176f   :  { %v942_v14 = vpop.permute.xlu1 %941 }
0x1770   :  { %v944_v16 = vmul.f32 %v942_v14, %v939_v13 }
0x1772   :  { %v946_v17 = vadd.f32 %v945_v15, %v944_v16 }
0x1774   :  { %v949_v18 = vpack.c.bf16 %v946_v17, %v946_v17 }
0x1776   :  { %951 = vrot.lane.b32.xlu0 %v949_v18, %s2503_s13 }
0x177c   :  { %v108_v19 = vpop.permute.xlu1 %107 }
0x177d   :  { %v195_v20 = vmul.f32 %v2587_v7, %v108_v19 }
0x177f   :  { %v225_v21 = vadd.f32 %v2592_v8, %v195_v20 }
0x1781   :  { %250 = vst.msk [vmem:[#allocation2 + $0x12] sm:$0x3] %vm240_vm1, %v225_v21 }
0x1788   :  { %v948_v28 = vld [vmem:[#allocation2 + $0x12] sm:$0x3] }
0x17e8   :  { %v952_v22 = vpop.permute.xlu0 %951 }
0x17e9   :  { %2272 = vmatmul.mubr.msk.bf16.vlgmr.msra.gmra.mxu1 %vm278_vm2, %v952_v22 }
0x17ea   :  { %2284 = vmatpush3.bf16.msra.mxu1 %v2549_v1  ;;  %2287 = vmatprep.mubr.msk.bf16.mxu1 %vm2500_vm0, %v2499_v0 }
0x17eb   :  { %2285 = vmatprep.subr.bf16.mxu1 %v2499_v0 }
0x17ee   :  { %2286 = vmatpush3.bf16.msra.mxu1 %v2558_v3 }
0x17ef   :  { %2299 = vmatprep.subr.bf16.mxu1 %v2499_v0 }
0x18a9   :  { %v990_v23 = vpop.f32.mrf.mxu1 }
0x18aa   :  { %v996_v24 = vadd.f32 %v990_v23, %v2582_v6  ;;  %v997_v29 = vadd.f32 %v990_v23, %v948_v28 }
0x18ab   :  { %v2273_v25 = vpop.f32.mrf.mxu1 }
0x18ac   :  { %1003 = vrot.lane.b32.xlu0 %v996_v24, %s2502_s30  ;;  %v998_v30 = vmul.f32 0.5, %v997_v29 }
0x18ad   :  { %v993_v26 = vpop.f32.mrf.mxu1 }
0x18ae   :  { %2433 = vtanh.f32 %v998_v30 }
0x18af   :  { %v2274_v27 = vpop.f32.mrf.mxu1 }
0x18bb   :  { %v2434_v31 = vpop.eup %2433 }
0x18bc   :  { %v1000_v32 = vmul.f32 0.5, %v2434_v31 }
0x18be   :  { %v1001_v33 = vadd.f32 0.5, %v1000_v32 }
0x18c0   :  { %v1013_v40 = vsub.f32 1.0, %v1001_v33  ;;  %v1019_v42 = vmul.f32 %v1001_v33, %v946_v17 }
0x191e   :  { %v1004_v34 = vpop.permute.xlu0 %1003 }
0x191f   :  { %v1006_v35 = vmul.f32 %v1004_v34, %v1001_v33  ;;  %v48_v33 = vld [vmem:[%s3033_s0 + $0x18] sm:$0x3] }
0x1921   :  { %1008 = vrot.lane.b32.xlu1 %v1006_v35, %s2502_s30 }
0x1993   :  { %v1009_v36 = vpop.permute.xlu1 %1008 }
0x1994   :  { %v1011_v37 = vadd.f32 %v1009_v36, %v948_v28 }
0x1996   :  { %2435 = vtanh.f32 %v1011_v37 }
0x19a3   :  { %v2436_v38 = vpop.eup %2435 }
0x19a4   :  { %1015 = vrot.lane.b32.xlu0 %v2436_v38, %s2503_s13 }
0x19a8   :  { %112 = vperm.xlu0 %2393, %v46_v39  }
0x1a16   :  { %v1016_v41 = vpop.permute.xlu0 %1015 }
0x1a17   :  { %v1018_v43 = vmul.f32 %v1016_v41, %v1013_v40 }
0x1a19   :  { %v1020_v44 = vadd.f32 %v1019_v42, %v1018_v43 }
0x1a1b   :  { %v1023_v45 = vpack.c.bf16 %v1020_v44, %v1020_v44 }
0x1a1d   :  { %1025 = vrot.lane.b32.xlu1 %v1023_v45, %s2503_s13 }
0x1a23   :  { %v113_v46 = vpop.permute.xlu0 %112 }
0x1a24   :  { %v196_v47 = vmul.f32 %v2587_v7, %v113_v46 }
0x1a26   :  { %v226_v48 = vadd.f32 %v2592_v8, %v196_v47 }
0x1a28   :  { %251 = vst.msk [vmem:[#allocation2 + $0x14] sm:$0x3] %vm240_vm1, %v226_v48 }
0x1a2f   :  { %v1022_v55 = vld [vmem:[#allocation2 + $0x14] sm:$0x3] }
0x1a8f   :  { %v1026_v49 = vpop.permute.xlu1 %1025 }
0x1a90   :  { %2280 = vmatmul.mubr.msk.bf16.vlgmr.msra.gmra.mxu0 %vm278_vm2, %v1026_v49 }
0x1a91   :  { %2292 = vmatpush3.bf16.msra.mxu0 %v2549_v1  ;;  %2295 = vmatprep.mubr.msk.bf16.mxu0 %vm2500_vm0, %v2499_v0 }
0x1a92   :  { %2293 = vmatprep.subr.bf16.mxu0 %v2499_v0 }
0x1a95   :  { %2294 = vmatpush3.bf16.msra.mxu0 %v2558_v3 }
0x1a96   :  { %2307 = vmatprep.subr.bf16.mxu0 %v2499_v0 }
0x1b50   :  { %v1064_v50 = vpop.f32.mrf.mxu0 }
0x1b51   :  { %v1070_v51 = vadd.f32 %v1064_v50, %v2582_v6  ;;  %v1071_v56 = vadd.f32 %v1064_v50, %v1022_v55 }
0x1b52   :  { %v2281_v52 = vpop.f32.mrf.mxu0 }
0x1b53   :  { %1077 = vrot.lane.b32.xlu1 %v1070_v51, %s2502_s30  ;;  %v1072_v57 = vmul.f32 0.5, %v1071_v56 }
0x1b54   :  { %v1067_v53 = vpop.f32.mrf.mxu0 }
0x1b55   :  { %2437 = vtanh.f32 %v1072_v57 }
0x1b56   :  { %v2282_v54 = vpop.f32.mrf.mxu0 }
0x1b62   :  { %v2438_v58 = vpop.eup %2437 }
0x1b63   :  { %v1074_v59 = vmul.f32 0.5, %v2438_v58 }
0x1b65   :  { %v1075_v60 = vadd.f32 0.5, %v1074_v59 }
0x1b67   :  { %v1087_v9 = vsub.f32 1.0, %v1075_v60  ;;  %v1093_v11 = vmul.f32 %v1075_v60, %v1020_v44  ;;  %v2810_v44 = vld [vmem:[%s3031_s3 + $0x8] sm:$0xff]  }
0x1bc5   :  { %v1078_v61 = vpop.permute.xlu1 %1077 }
0x1bc6   :  { %v1080_v62 = vmul.f32 %v1078_v61, %v1075_v60  ;;  %v49_v60 = vld [vmem:[%s3033_s0 + $0x1a] sm:$0x3] }
0x1bc8   :  { %1082 = vrot.lane.b32.xlu0 %v1080_v62, %s2502_s30 }
0x1c3a   :  { %v1083_v63 = vpop.permute.xlu0 %1082 }
0x1c3b   :  { %v1085_v2 = vadd.f32 %v1083_v63, %v1022_v55 }
0x1c3d   :  { %2439 = vtanh.f32 %v1085_v2 }
0x1c4a   :  { %v2440_v4 = vpop.eup %2439 }
0x1c4b   :  { %1089 = vrot.lane.b32.xlu1 %v2440_v4, %s2503_s13 }
0x1c4f   :  { %117 = vperm.xlu1 %2394, %v47_v5  }
0x1cbd   :  { %v1090_v10 = vpop.permute.xlu1 %1089 }
0x1cbe   :  { %v1092_v12 = vmul.f32 %v1090_v10, %v1087_v9  ;;  %v2834_v10 = vld [vmem:[%s3034_s1] ss:$0 sm:$0xff] }
0x1cc0   :  { %v1094_v13 = vadd.f32 %v1093_v11, %v1092_v12  ;;  %v2840_v12 = vld [vmem:[%s3035_s2] ss:$0 sm:$0xff] }
0x1cc2   :  { %v1097_v14 = vpack.c.bf16 %v1094_v13, %v1094_v13 }
0x1cc4   :  { %1099 = vrot.lane.b32.xlu0 %v1097_v14, %s2503_s13 }
0x1cca   :  { %v118_v15 = vpop.permute.xlu1 %117 }
0x1ccb   :  { %v197_v16 = vmul.f32 %v2587_v7, %v118_v15 }
0x1ccd   :  { %v227_v17 = vadd.f32 %v2592_v8, %v197_v16 }
0x1ccf   :  { %252 = vst.msk [vmem:[#allocation2 + $0x16] sm:$0x3] %vm240_vm1, %v227_v17 }
0x1cd6   :  { %v1096_v24 = vld [vmem:[#allocation2 + $0x16] sm:$0x3] }
0x1d36   :  { %v1100_v18 = vpop.permute.xlu0 %1099 }
0x1d37   :  { %2288 = vmatmul.mubr.msk.bf16.vlgmr.msra.gmra.mxu1 %vm278_vm2, %v1100_v18 }
0x1d38   :  { %2300 = vmatpush3.bf16.msra.mxu1 %v2549_v1  ;;  %2303 = vmatprep.mubr.msk.bf16.mxu1 %vm2500_vm0, %v2499_v0 }
0x1d39   :  { %2301 = vmatprep.subr.bf16.mxu1 %v2499_v0 }
0x1d3c   :  { %2302 = vmatpush3.bf16.msra.mxu1 %v2558_v3 }
0x1d3d   :  { %2315 = vmatprep.subr.bf16.mxu1 %v2499_v0 }
0x1df7   :  { %v1138_v19 = vpop.f32.mrf.mxu1 }
0x1df8   :  { %v1144_v20 = vadd.f32 %v1138_v19, %v2582_v6  ;;  %v1145_v25 = vadd.f32 %v1138_v19, %v1096_v24 }
0x1df9   :  { %v2289_v21 = vpop.f32.mrf.mxu1 }
0x1dfa   :  { %1151 = vrot.lane.b32.xlu0 %v1144_v20, %s2502_s30  ;;  %v1146_v1 = vmul.f32 0.5, %v1145_v25 }
0x1dfb   :  { %v1141_v22 = vpop.f32.mrf.mxu1 }
0x1dfc   :  { %2441 = vtanh.f32 %v1146_v1 }
0x1dfd   :  { %v2290_v23 = vpop.f32.mrf.mxu1 }
0x1e09   :  { %v2442_v26 = vpop.eup %2441 }
0x1e0a   :  { %v1148_v27 = vmul.f32 0.5, %v2442_v26 }
0x1e0c   :  { %v1149_v28 = vadd.f32 0.5, %v1148_v27 }
0x1e0e   :  { %v1161_v34 = vsub.f32 1.0, %v1149_v28  ;;  %v1167_v36 = vmul.f32 %v1149_v28, %v1094_v13 }
0x1e6c   :  { %v1152_v29 = vpop.permute.xlu0 %1151 }
0x1e6d   :  { %v1154_v30 = vmul.f32 %v1152_v29, %v1149_v28 }
0x1e6f   :  { %1156 = vrot.lane.b32.xlu1 %v1154_v30, %s2502_s30  ;;  %v50_v30 = vld [vmem:[%s3033_s0 + $0x1c] sm:$0x3] }
0x1ee1   :  { %v1157_v3 = vpop.permute.xlu1 %1156 }
0x1ee2   :  { %v1159_v31 = vadd.f32 %v1157_v3, %v1096_v24 }
0x1ee4   :  { %2443 = vtanh.f32 %v1159_v31 }
0x1ef1   :  { %v2444_v32 = vpop.eup %2443 }
0x1ef2   :  { %1163 = vrot.lane.b32.xlu0 %v2444_v32, %s2503_s13 }
0x1ef6   :  { %122 = vperm.xlu0 %2393, %v48_v33  }
0x1f64   :  { %v1164_v35 = vpop.permute.xlu0 %1163 }
0x1f65   :  { %v1166_v37 = vmul.f32 %v1164_v35, %v1161_v34 }
0x1f67   :  { %v1168_v38 = vadd.f32 %v1167_v36, %v1166_v37 }
0x1f69   :  { %v1171_v39 = vpack.c.bf16 %v1168_v38, %v1168_v38 }
0x1f6b   :  { %1173 = vrot.lane.b32.xlu1 %v1171_v39, %s2503_s13 }
0x1f71   :  { %v123_v40 = vpop.permute.xlu0 %122 }
0x1f72   :  { %v198_v41 = vmul.f32 %v2587_v7, %v123_v40  ;;  %v2819_v7 = vld [vmem:[%s3031_s3] sm:$0xff]  }
0x1f74   :  { %v228_v42 = vadd.f32 %v2592_v8, %v198_v41 }
0x1f76   :  { %253 = vst.msk [vmem:[#allocation2 + $0x18] sm:$0x3] %vm240_vm1, %v228_v42 }
0x1f7d   :  { %v1170_v49 = vld [vmem:[#allocation2 + $0x18] sm:$0x3] }
0x1fdd   :  { %v1174_v43 = vpop.permute.xlu1 %1173 }
0x1fde   :  { %2296 = vmatmul.mubr.msk.bf16.vlgmr.msra.gmra.mxu0 %vm278_vm2, %v1174_v43 }
0x1fdf   :  { %2308 = vmatpush3.bf16.msra.mxu0 %v2810_v44  ;;  %2311 = vmatprep.mubr.msk.bf16.mxu0 %vm2500_vm0, %v2499_v0 }
0x1fe0   :  { %2309 = vmatprep.subr.bf16.mxu0 %v2499_v0 }
0x1fe3   :  { %2310 = vmatpush3.bf16.msra.mxu0 %v2819_v7 }
0x1fe4   :  { %2323 = vmatprep.subr.bf16.mxu0 %v2499_v0 }
0x209e   :  { %v1212_v8 = vpop.f32.mrf.mxu0 }
0x209f   :  { %v1218_v45 = vadd.f32 %v1212_v8, %v2582_v6  ;;  %v1219_v50 = vadd.f32 %v1212_v8, %v1170_v49 }
0x20a0   :  { %v2297_v46 = vpop.f32.mrf.mxu0 }
0x20a1   :  { %1225 = vrot.lane.b32.xlu1 %v1218_v45, %s2502_s30  ;;  %v1220_v51 = vmul.f32 0.5, %v1219_v50 }
0x20a2   :  { %v1215_v47 = vpop.f32.mrf.mxu0 }
0x20a3   :  { %2445 = vtanh.f32 %v1220_v51 }
0x20a4   :  { %v2298_v48 = vpop.f32.mrf.mxu0 }
0x20b0   :  { %v2446_v52 = vpop.eup %2445 }
0x20b1   :  { %v1222_v53 = vmul.f32 0.5, %v2446_v52 }
0x20b3   :  { %v1223_v54 = vadd.f32 0.5, %v1222_v53 }
0x20b5   :  { %v1235_v61 = vsub.f32 1.0, %v1223_v54  ;;  %v1241_v63 = vmul.f32 %v1223_v54, %v1168_v38 }
0x2113   :  { %v1226_v55 = vpop.permute.xlu1 %1225 }
0x2114   :  { %v1228_v56 = vmul.f32 %v1226_v55, %v1223_v54 }
0x2116   :  { %1230 = vrot.lane.b32.xlu0 %v1228_v56, %s2502_s30  ;;  %v51_v56 = vld [vmem:[%s3033_s0 + $0x1e] sm:$0x3] }
0x2188   :  { %v1231_v57 = vpop.permute.xlu0 %1230 }
0x2189   :  { %v1233_v58 = vadd.f32 %v1231_v57, %v1170_v49 }
0x218b   :  { %2447 = vtanh.f32 %v1233_v58 }
0x2198   :  { %v2448_v59 = vpop.eup %2447 }
0x2199   :  { %1237 = vrot.lane.b32.xlu1 %v2448_v59, %s2503_s13 }
0x219d   :  { %127 = vperm.xlu1 %2394, %v49_v60  }
0x220b   :  { %v1238_v62 = vpop.permute.xlu1 %1237 }
0x220c   :  { %v1240_v2 = vmul.f32 %v1238_v62, %v1235_v61 }
0x220e   :  { %v1242_v4 = vadd.f32 %v1241_v63, %v1240_v2 }
0x2210   :  { %v1245_v5 = vpack.c.bf16 %v1242_v4, %v1242_v4 }
0x2212   :  { %1247 = vrot.lane.b32.xlu0 %v1245_v5, %s2503_s13 }
0x2218   :  { %v128_v9 = vpop.permute.xlu1 %127 }
0x2219   :  { %v199_v11 = vmul.f32 %v2834_v10, %v128_v9 }
0x221b   :  { %v229_v13 = vadd.f32 %v2840_v12, %v199_v11 }
0x221d   :  { %254 = vst.msk [vmem:[#allocation2 + $0x1a] sm:$0x3] %vm240_vm1, %v229_v13 }
0x2224   :  { %v1244_v20 = vld [vmem:[#allocation2 + $0x1a] sm:$0x3] }
0x2284   :  { %v1248_v14 = vpop.permute.xlu0 %1247 }
0x2285   :  { %2304 = vmatmul.mubr.msk.bf16.vlgmr.msra.gmra.mxu1 %vm278_vm2, %v1248_v14 }
0x2286   :  { %2316 = vmatpush3.bf16.msra.mxu1 %v2810_v44  ;;  %2319 = vmatprep.mubr.msk.bf16.mxu1 %vm2500_vm0, %v2499_v0 }
0x2287   :  { %2317 = vmatprep.subr.bf16.mxu1 %v2499_v0 }
0x228a   :  { %2318 = vmatpush3.bf16.msra.mxu1 %v2819_v7 }
0x228b   :  { %2331 = vmatprep.subr.bf16.mxu1 %v2499_v0 }
0x2345   :  { %v1286_v15 = vpop.f32.mrf.mxu1 }
0x2346   :  { %v1292_v16 = vadd.f32 %v1286_v15, %v2582_v6  ;;  %v1293_v21 = vadd.f32 %v1286_v15, %v1244_v20 }
0x2347   :  { %v2305_v17 = vpop.f32.mrf.mxu1 }
0x2348   :  { %1299 = vrot.lane.b32.xlu0 %v1292_v16, %s2502_s30  ;;  %v1294_v22 = vmul.f32 0.5, %v1293_v21 }
0x2349   :  { %v1289_v18 = vpop.f32.mrf.mxu1 }
0x234a   :  { %2449 = vtanh.f32 %v1294_v22 }
0x234b   :  { %v2306_v19 = vpop.f32.mrf.mxu1 }
0x2357   :  { %v2450_v23 = vpop.eup %2449 }
0x2358   :  { %v1296_v24 = vmul.f32 0.5, %v2450_v23 }
0x235a   :  { %v1297_v25 = vadd.f32 0.5, %v1296_v24 }
0x235c   :  { %v1309_v3 = vsub.f32 1.0, %v1297_v25  ;;  %v1315_v32 = vmul.f32 %v1297_v25, %v1242_v4 }
0x23ba   :  { %v1300_v1 = vpop.permute.xlu0 %1299 }
0x23bb   :  { %v1302_v26 = vmul.f32 %v1300_v1, %v1297_v25 }
0x23bd   :  { %1304 = vrot.lane.b32.xlu1 %v1302_v26, %s2502_s30  ;;  %v52_v26 = vld [vmem:[%s3033_s0 + $0x20] sm:$0x3] }
0x242f   :  { %v1305_v27 = vpop.permute.xlu1 %1304 }
0x2430   :  { %v1307_v28 = vadd.f32 %v1305_v27, %v1244_v20 }
0x2432   :  { %2451 = vtanh.f32 %v1307_v28 }
0x243f   :  { %v2452_v29 = vpop.eup %2451 }
0x2440   :  { %1311 = vrot.lane.b32.xlu0 %v2452_v29, %s2503_s13 }
0x2444   :  { %132 = vperm.xlu0 %2393, %v50_v30  }
0x24b2   :  { %v1312_v31 = vpop.permute.xlu0 %1311 }
0x24b3   :  { %v1314_v33 = vmul.f32 %v1312_v31, %v1309_v3 }
0x24b5   :  { %v1316_v34 = vadd.f32 %v1315_v32, %v1314_v33 }
0x24b7   :  { %v1319_v35 = vpack.c.bf16 %v1316_v34, %v1316_v34 }
0x24b9   :  { %1321 = vrot.lane.b32.xlu1 %v1319_v35, %s2503_s13 }
0x24bf   :  { %v133_v36 = vpop.permute.xlu0 %132 }
0x24c0   :  { %v200_v37 = vmul.f32 %v2834_v10, %v133_v36 }
0x24c2   :  { %v230_v38 = vadd.f32 %v2840_v12, %v200_v37 }
0x24c4   :  { %255 = vst.msk [vmem:[#allocation2 + $0x1c] sm:$0x3] %vm240_vm1, %v230_v38 }
0x24cb   :  { %v1318_v45 = vld [vmem:[#allocation2 + $0x1c] sm:$0x3] }
0x252b   :  { %v1322_v39 = vpop.permute.xlu1 %1321 }
0x252c   :  { %2312 = vmatmul.mubr.msk.bf16.vlgmr.msra.gmra.mxu0 %vm278_vm2, %v1322_v39 }
0x252d   :  { %2324 = vmatpush3.bf16.msra.mxu0 %v2810_v44  ;;  %2327 = vmatprep.mubr.msk.bf16.mxu0 %vm2500_vm0, %v2499_v0 }
0x252e   :  { %2325 = vmatprep.subr.bf16.mxu0 %v2499_v0 }
0x2531   :  { %2326 = vmatpush3.bf16.msra.mxu0 %v2819_v7 }
0x2532   :  { %2339 = vmatprep.subr.bf16.mxu0 %v2499_v0 }
0x25ec   :  { %v1360_v40 = vpop.f32.mrf.mxu0 }
0x25ed   :  { %v1366_v41 = vadd.f32 %v1360_v40, %v2582_v6  ;;  %v1367_v46 = vadd.f32 %v1360_v40, %v1318_v45 }
0x25ee   :  { %v2313_v42 = vpop.f32.mrf.mxu0 }
0x25ef   :  { %1373 = vrot.lane.b32.xlu1 %v1366_v41, %s2502_s30  ;;  %v1368_v47 = vmul.f32 0.5, %v1367_v46 }
0x25f0   :  { %v1363_v43 = vpop.f32.mrf.mxu0 }
0x25f1   :  { %2453 = vtanh.f32 %v1368_v47 }
0x25f2   :  { %v2314_v8 = vpop.f32.mrf.mxu0 }
0x25fe   :  { %v2454_v48 = vpop.eup %2453 }
0x25ff   :  { %v1370_v49 = vmul.f32 0.5, %v2454_v48 }
0x2601   :  { %v1371_v50 = vadd.f32 0.5, %v1370_v49 }
0x2603   :  { %v1383_v57 = vsub.f32 1.0, %v1371_v50  ;;  %v1389_v59 = vmul.f32 %v1371_v50, %v1316_v34 }
0x2661   :  { %v1374_v51 = vpop.permute.xlu1 %1373 }
0x2662   :  { %v1376_v52 = vmul.f32 %v1374_v51, %v1371_v50 }
0x2664   :  { %1378 = vrot.lane.b32.xlu0 %v1376_v52, %s2502_s30  ;;  %v53_v52 = vld [vmem:[%s3033_s0 + $0x22] sm:$0x3] }
0x26d6   :  { %v1379_v53 = vpop.permute.xlu0 %1378 }
0x26d7   :  { %v1381_v54 = vadd.f32 %v1379_v53, %v1318_v45 }
0x26d9   :  { %2455 = vtanh.f32 %v1381_v54 }
0x26e6   :  { %v2456_v55 = vpop.eup %2455 }
0x26e7   :  { %1385 = vrot.lane.b32.xlu1 %v2456_v55, %s2503_s13 }
0x26eb   :  { %137 = vperm.xlu1 %2394, %v51_v56  }
0x2759   :  { %v1386_v58 = vpop.permute.xlu1 %1385 }
0x275a   :  { %v1388_v60 = vmul.f32 %v1386_v58, %v1383_v57 }
0x275c   :  { %v1390_v61 = vadd.f32 %v1389_v59, %v1388_v60 }
0x275e   :  { %v1393_v62 = vpack.c.bf16 %v1390_v61, %v1390_v61 }
0x2760   :  { %1395 = vrot.lane.b32.xlu0 %v1393_v62, %s2503_s13 }
0x2766   :  { %v138_v63 = vpop.permute.xlu1 %137 }
0x2767   :  { %v201_v2 = vmul.f32 %v2834_v10, %v138_v63 }
0x2769   :  { %v231_v4 = vadd.f32 %v2840_v12, %v201_v2 }
0x276b   :  { %256 = vst.msk [vmem:[#allocation2 + $0x1e] sm:$0x3] %vm240_vm1, %v231_v4 }
0x2772   :  { %v1392_v16 = vld [vmem:[#allocation2 + $0x1e] sm:$0x3] }
0x27d2   :  { %v1396_v5 = vpop.permute.xlu0 %1395 }
0x27d3   :  { %2320 = vmatmul.mubr.msk.bf16.vlgmr.msra.gmra.mxu1 %vm278_vm2, %v1396_v5 }
0x27d4   :  { %2332 = vmatpush3.bf16.msra.mxu1 %v2810_v44  ;;  %2335 = vmatprep.mubr.msk.bf16.mxu1 %vm2500_vm0, %v2499_v0 }
0x27d5   :  { %2333 = vmatprep.subr.bf16.mxu1 %v2499_v0 }
0x27d8   :  { %2334 = vmatpush3.bf16.msra.mxu1 %v2819_v7 }
0x27d9   :  { %2347 = vmatprep.subr.bf16.mxu1 %v2499_v0 }
0x2893   :  { %v1434_v9 = vpop.f32.mrf.mxu1 }
0x2894   :  { %v1440_v11 = vadd.f32 %v1434_v9, %v2582_v6  ;;  %v1441_v17 = vadd.f32 %v1434_v9, %v1392_v16 }
0x2895   :  { %v2321_v13 = vpop.f32.mrf.mxu1 }
0x2896   :  { %1447 = vrot.lane.b32.xlu0 %v1440_v11, %s2502_s30  ;;  %v1442_v18 = vmul.f32 0.5, %v1441_v17 }
0x2897   :  { %v1437_v14 = vpop.f32.mrf.mxu1 }
0x2898   :  { %2457 = vtanh.f32 %v1442_v18 }
0x2899   :  { %v2322_v15 = vpop.f32.mrf.mxu1 }
0x28a5   :  { %v2458_v19 = vpop.eup %2457 }
0x28a6   :  { %v1444_v20 = vmul.f32 0.5, %v2458_v19 }
0x28a8   :  { %v1445_v21 = vadd.f32 0.5, %v1444_v20 }
0x28aa   :  { %v1457_v27 = vsub.f32 1.0, %v1445_v21  ;;  %v1463_v29 = vmul.f32 %v1445_v21, %v1390_v61 }
0x2908   :  { %v1448_v22 = vpop.permute.xlu0 %1447 }
0x2909   :  { %v1450_v23 = vmul.f32 %v1448_v22, %v1445_v21 }
0x290b   :  { %1452 = vrot.lane.b32.xlu1 %v1450_v23, %s2502_s30  ;;  %v54_v23 = vld [vmem:[%s3033_s0 + $0x24] sm:$0x3] }
0x297d   :  { %v1453_v24 = vpop.permute.xlu1 %1452 }
0x297e   :  { %v1455_v25 = vadd.f32 %v1453_v24, %v1392_v16 }
0x2980   :  { %2459 = vtanh.f32 %v1455_v25 }
0x298d   :  { %v2460_v1 = vpop.eup %2459 }
0x298e   :  { %1459 = vrot.lane.b32.xlu0 %v2460_v1, %s2503_s13 }
0x2992   :  { %142 = vperm.xlu0 %2393, %v52_v26  }
0x2a00   :  { %v1460_v28 = vpop.permute.xlu0 %1459 }
0x2a01   :  { %v1462_v30 = vmul.f32 %v1460_v28, %v1457_v27 }
0x2a03   :  { %v1464_v3 = vadd.f32 %v1463_v29, %v1462_v30 }
0x2a05   :  { %v1467_v31 = vpack.c.bf16 %v1464_v3, %v1464_v3 }
0x2a07   :  { %1469 = vrot.lane.b32.xlu1 %v1467_v31, %s2503_s13 }
0x2a0d   :  { %v143_v32 = vpop.permute.xlu0 %142 }
0x2a0e   :  { %v202_v33 = vmul.f32 %v2834_v10, %v143_v32 }
0x2a10   :  { %v232_v34 = vadd.f32 %v2840_v12, %v202_v33 }
0x2a12   :  { %257 = vst.msk [vmem:[#allocation2 + $0x20] sm:$0x3] %vm240_vm1, %v232_v34 }
0x2a19   :  { %v1466_v41 = vld [vmem:[#allocation2 + $0x20] sm:$0x3] }
0x2a79   :  { %v1470_v35 = vpop.permute.xlu1 %1469 }
0x2a7a   :  { %2328 = vmatmul.mubr.msk.bf16.vlgmr.msra.gmra.mxu0 %vm278_vm2, %v1470_v35 }
0x2a7b   :  { %2340 = vmatpush3.bf16.msra.mxu0 %v2810_v44  ;;  %2343 = vmatprep.mubr.msk.bf16.mxu0 %vm2500_vm0, %v2499_v0 }
0x2a7c   :  { %2341 = vmatprep.subr.bf16.mxu0 %v2499_v0 }
0x2a7f   :  { %2342 = vmatpush3.bf16.msra.mxu0 %v2819_v7 }
0x2a80   :  { %2355 = vmatprep.subr.bf16.mxu0 %v2499_v0 }
0x2b3a   :  { %v1508_v36 = vpop.f32.mrf.mxu0 }
0x2b3b   :  { %v1514_v37 = vadd.f32 %v1508_v36, %v2582_v6  ;;  %v1515_v42 = vadd.f32 %v1508_v36, %v1466_v41 }
0x2b3c   :  { %v2329_v38 = vpop.f32.mrf.mxu0 }
0x2b3d   :  { %1521 = vrot.lane.b32.xlu1 %v1514_v37, %s2502_s30  ;;  %v1516_v43 = vmul.f32 0.5, %v1515_v42 }
0x2b3e   :  { %v1511_v39 = vpop.f32.mrf.mxu0 }
0x2b3f   :  { %2461 = vtanh.f32 %v1516_v43 }
0x2b40   :  { %v2330_v40 = vpop.f32.mrf.mxu0 }
0x2b4c   :  { %v2462_v8 = vpop.eup %2461 }
0x2b4d   :  { %v1518_v45 = vmul.f32 0.5, %v2462_v8 }
0x2b4f   :  { %v1519_v46 = vadd.f32 0.5, %v1518_v45 }
0x2b51   :  { %v1531_v53 = vsub.f32 1.0, %v1519_v46  ;;  %v1537_v55 = vmul.f32 %v1519_v46, %v1464_v3 }
0x2baf   :  { %v1522_v47 = vpop.permute.xlu1 %1521 }
0x2bb0   :  { %v1524_v48 = vmul.f32 %v1522_v47, %v1519_v46 }
0x2bb2   :  { %1526 = vrot.lane.b32.xlu0 %v1524_v48, %s2502_s30  ;;  %v55_v48 = vld [vmem:[%s3033_s0 + $0x26] sm:$0x3] }
0x2c24   :  { %v1527_v49 = vpop.permute.xlu0 %1526 }
0x2c25   :  { %v1529_v50 = vadd.f32 %v1527_v49, %v1466_v41 }
0x2c27   :  { %2463 = vtanh.f32 %v1529_v50 }
0x2c34   :  { %v2464_v51 = vpop.eup %2463 }
0x2c35   :  { %1533 = vrot.lane.b32.xlu1 %v2464_v51, %s2503_s13 }
0x2c39   :  { %147 = vperm.xlu1 %2394, %v53_v52  }
0x2ca7   :  { %v1534_v54 = vpop.permute.xlu1 %1533 }
0x2ca8   :  { %v1536_v56 = vmul.f32 %v1534_v54, %v1531_v53 }
0x2caa   :  { %v1538_v57 = vadd.f32 %v1537_v55, %v1536_v56 }
0x2cac   :  { %v1541_v58 = vpack.c.bf16 %v1538_v57, %v1538_v57 }
0x2cae   :  { %1543 = vrot.lane.b32.xlu0 %v1541_v58, %s2503_s13 }
0x2cb4   :  { %v148_v59 = vpop.permute.xlu1 %147 }
0x2cb5   :  { %v203_v60 = vmul.f32 %v2834_v10, %v148_v59 }
0x2cb7   :  { %v233_v61 = vadd.f32 %v2840_v12, %v203_v60 }
0x2cb9   :  { %258 = vst.msk [vmem:[#allocation2 + $0x22] sm:$0x3] %vm240_vm1, %v233_v61 }
0x2cc0   :  { %v1540_v11 = vld [vmem:[#allocation2 + $0x22] sm:$0x3] }
0x2d20   :  { %v1544_v62 = vpop.permute.xlu0 %1543 }
0x2d21   :  { %2336 = vmatmul.mubr.msk.bf16.vlgmr.msra.gmra.mxu1 %vm278_vm2, %v1544_v62 }
0x2d22   :  { %2348 = vmatpush3.bf16.msra.mxu1 %v2810_v44  ;;  %2351 = vmatprep.mubr.msk.bf16.mxu1 %vm2500_vm0, %v2499_v0 }
0x2d23   :  { %2349 = vmatprep.subr.bf16.mxu1 %v2499_v0 }
0x2d26   :  { %2350 = vmatpush3.bf16.msra.mxu1 %v2819_v7 }
0x2d27   :  { %2363 = vmatprep.subr.bf16.mxu1 %v2499_v0 }
0x2de1   :  { %v1582_v63 = vpop.f32.mrf.mxu1 }
0x2de2   :  { %v1588_v2 = vadd.f32 %v1582_v63, %v2582_v6  ;;  %v1589_v13 = vadd.f32 %v1582_v63, %v1540_v11 }
0x2de3   :  { %v2337_v4 = vpop.f32.mrf.mxu1 }
0x2de4   :  { %1595 = vrot.lane.b32.xlu0 %v1588_v2, %s2502_s30  ;;  %v1590_v14 = vmul.f32 0.5, %v1589_v13 }
0x2de5   :  { %v1585_v5 = vpop.f32.mrf.mxu1 }
0x2de6   :  { %2465 = vtanh.f32 %v1590_v14 }
0x2de7   :  { %v2338_v9 = vpop.f32.mrf.mxu1 }
0x2df3   :  { %v2466_v15 = vpop.eup %2465 }
0x2df4   :  { %v1592_v16 = vmul.f32 0.5, %v2466_v15 }
0x2df6   :  { %v1593_v17 = vadd.f32 0.5, %v1592_v16 }
0x2df8   :  { %v1605_v24 = vsub.f32 1.0, %v1593_v17  ;;  %v1611_v1 = vmul.f32 %v1593_v17, %v1538_v57 }
0x2e56   :  { %v1596_v18 = vpop.permute.xlu0 %1595 }
0x2e57   :  { %v1598_v19 = vmul.f32 %v1596_v18, %v1593_v17 }
0x2e59   :  { %1600 = vrot.lane.b32.xlu1 %v1598_v19, %s2502_s30  ;;  %v56_v19 = vld [vmem:[%s3033_s0 + $0x28] sm:$0x3] }
0x2ecb   :  { %v1601_v20 = vpop.permute.xlu1 %1600 }
0x2ecc   :  { %v1603_v21 = vadd.f32 %v1601_v20, %v1540_v11 }
0x2ece   :  { %2467 = vtanh.f32 %v1603_v21 }
0x2edb   :  { %v2468_v22 = vpop.eup %2467 }
0x2edc   :  { %1607 = vrot.lane.b32.xlu0 %v2468_v22, %s2503_s13 }
0x2ee0   :  { %152 = vperm.xlu0 %2393, %v54_v23  }
0x2f4e   :  { %v1608_v25 = vpop.permute.xlu0 %1607 }
0x2f4f   :  { %v1610_v26 = vmul.f32 %v1608_v25, %v1605_v24 }
0x2f51   :  { %v1612_v27 = vadd.f32 %v1611_v1, %v1610_v26 }
0x2f53   :  { %v1615_v28 = vpack.c.bf16 %v1612_v27, %v1612_v27 }
0x2f55   :  { %1617 = vrot.lane.b32.xlu1 %v1615_v28, %s2503_s13 }
0x2f5b   :  { %v153_v29 = vpop.permute.xlu0 %152 }
0x2f5c   :  { %v204_v30 = vmul.f32 %v2834_v10, %v153_v29 }
0x2f5e   :  { %v234_v3 = vadd.f32 %v2840_v12, %v204_v30 }
0x2f60   :  { %259 = vst.msk [vmem:[#allocation2 + $0x24] sm:$0x3] %vm240_vm1, %v234_v3 }
0x2f67   :  { %v1614_v37 = vld [vmem:[#allocation2 + $0x24] sm:$0x3] }
0x2fc7   :  { %v1618_v31 = vpop.permute.xlu1 %1617 }
0x2fc8   :  { %2344 = vmatmul.mubr.msk.bf16.vlgmr.msra.gmra.mxu0 %vm278_vm2, %v1618_v31 }
0x2fc9   :  { %2356 = vmatpush3.bf16.msra.mxu0 %v2810_v44  ;;  %2359 = vmatprep.mubr.msk.bf16.mxu0 %vm2500_vm0, %v2499_v0 }
0x2fca   :  { %2357 = vmatprep.subr.bf16.mxu0 %v2499_v0 }
0x2fcd   :  { %2358 = vmatpush3.bf16.msra.mxu0 %v2819_v7 }
0x2fce   :  { %2371 = vmatprep.subr.bf16.mxu0 %v2499_v0 }
0x3088   :  { %v1656_v32 = vpop.f32.mrf.mxu0 }
0x3089   :  { %v1662_v33 = vadd.f32 %v1656_v32, %v2582_v6  ;;  %v1663_v38 = vadd.f32 %v1656_v32, %v1614_v37 }
0x308a   :  { %v2345_v34 = vpop.f32.mrf.mxu0 }
0x308b   :  { %1669 = vrot.lane.b32.xlu1 %v1662_v33, %s2502_s30  ;;  %v1664_v39 = vmul.f32 0.5, %v1663_v38 }
0x308c   :  { %v1659_v35 = vpop.f32.mrf.mxu0 }
0x308d   :  { %2469 = vtanh.f32 %v1664_v39 }
0x308e   :  { %v2346_v36 = vpop.f32.mrf.mxu0 }
0x309a   :  { %v2470_v40 = vpop.eup %2469 }
0x309b   :  { %v1666_v41 = vmul.f32 0.5, %v2470_v40 }
0x309d   :  { %v1667_v42 = vadd.f32 0.5, %v1666_v41 }
0x309f   :  { %v1679_v49 = vsub.f32 1.0, %v1667_v42  ;;  %v1685_v51 = vmul.f32 %v1667_v42, %v1612_v27 }
0x30fd   :  { %v1670_v43 = vpop.permute.xlu1 %1669 }
0x30fe   :  { %v1672_v8 = vmul.f32 %v1670_v43, %v1667_v42 }
0x3100   :  { %1674 = vrot.lane.b32.xlu0 %v1672_v8, %s2502_s30  ;;  %v57_v8 = vld [vmem:[%s3033_s0 + $0x2a] sm:$0x3] }
0x3172   :  { %v1675_v45 = vpop.permute.xlu0 %1674 }
0x3173   :  { %v1677_v46 = vadd.f32 %v1675_v45, %v1614_v37 }
0x3175   :  { %2471 = vtanh.f32 %v1677_v46 }
0x3182   :  { %v2472_v47 = vpop.eup %2471 }
0x3183   :  { %1681 = vrot.lane.b32.xlu1 %v2472_v47, %s2503_s13 }
0x3187   :  { %157 = vperm.xlu1 %2394, %v55_v48  }
0x31f5   :  { %v1682_v50 = vpop.permute.xlu1 %1681 }
0x31f6   :  { %v1684_v52 = vmul.f32 %v1682_v50, %v1679_v49 }
0x31f8   :  { %v1686_v53 = vadd.f32 %v1685_v51, %v1684_v52 }
0x31fa   :  { %v1689_v54 = vpack.c.bf16 %v1686_v53, %v1686_v53 }
0x31fc   :  { %1691 = vrot.lane.b32.xlu0 %v1689_v54, %s2503_s13 }
0x3202   :  { %v158_v55 = vpop.permute.xlu1 %157 }
0x3203   :  { %v205_v56 = vmul.f32 %v2834_v10, %v158_v55 }
0x3205   :  { %v235_v57 = vadd.f32 %v2840_v12, %v205_v56 }
0x3207   :  { %260 = vst.msk [vmem:[#allocation2 + $0x26] sm:$0x3] %vm240_vm1, %v235_v57 }
0x320e   :  { %v1688_v2 = vld [vmem:[#allocation2 + $0x26] sm:$0x3] }
0x326e   :  { %v1692_v58 = vpop.permute.xlu0 %1691 }
0x326f   :  { %2352 = vmatmul.mubr.msk.bf16.vlgmr.msra.gmra.mxu1 %vm278_vm2, %v1692_v58 }
0x3270   :  { %2364 = vmatpush3.bf16.msra.mxu1 %v2810_v44  ;;  %2367 = vmatprep.mubr.msk.bf16.mxu1 %vm2500_vm0, %v2499_v0 }
0x3271   :  { %2365 = vmatprep.subr.bf16.mxu1 %v2499_v0 }
0x3274   :  { %2366 = vmatpush3.bf16.msra.mxu1 %v2819_v7 }
0x3275   :  { %2379 = vmatprep.subr.bf16.mxu1 %v2499_v0 }
0x332f   :  { %v1730_v59 = vpop.f32.mrf.mxu1 }
0x3330   :  { %v1736_v60 = vadd.f32 %v1730_v59, %v2582_v6  ;;  %v1737_v4 = vadd.f32 %v1730_v59, %v1688_v2 }
0x3331   :  { %v2353_v61 = vpop.f32.mrf.mxu1 }
0x3332   :  { %1743 = vrot.lane.b32.xlu0 %v1736_v60, %s2502_s30  ;;  %v1738_v5 = vmul.f32 0.5, %v1737_v4 }
0x3333   :  { %v1733_v62 = vpop.f32.mrf.mxu1 }
0x3334   :  { %2473 = vtanh.f32 %v1738_v5 }
0x3335   :  { %v2354_v63 = vpop.f32.mrf.mxu1 }
0x3341   :  { %v2474_v9 = vpop.eup %2473 }
0x3342   :  { %v1740_v11 = vmul.f32 0.5, %v2474_v9 }
0x3344   :  { %v1741_v13 = vadd.f32 0.5, %v1740_v11  ;;  %v58_v11 = vld [vmem:[%s3033_s0 + $0x2c] sm:$0x3] }
0x3346   :  { %v1753_v20 = vsub.f32 1.0, %v1741_v13  ;;  %v1759_v22 = vmul.f32 %v1741_v13, %v1686_v53 }
0x33a4   :  { %v1744_v14 = vpop.permute.xlu0 %1743 }
0x33a5   :  { %v1746_v15 = vmul.f32 %v1744_v14, %v1741_v13 }
0x33a7   :  { %1748 = vrot.lane.b32.xlu1 %v1746_v15, %s2502_s30 }
0x3419   :  { %v1749_v16 = vpop.permute.xlu1 %1748 }
0x341a   :  { %v1751_v17 = vadd.f32 %v1749_v16, %v1688_v2 }
0x341c   :  { %2475 = vtanh.f32 %v1751_v17 }
0x3429   :  { %v2476_v18 = vpop.eup %2475 }
0x342a   :  { %1755 = vrot.lane.b32.xlu0 %v2476_v18, %s2503_s13 }
0x342e   :  { %162 = vperm.xlu0 %2393, %v56_v19  }
0x349c   :  { %v1756_v21 = vpop.permute.xlu0 %1755 }
0x349d   :  { %v1758_v23 = vmul.f32 %v1756_v21, %v1753_v20 }
0x349f   :  { %v1760_v24 = vadd.f32 %v1759_v22, %v1758_v23 }
0x34a1   :  { %v1763_v25 = vpack.c.bf16 %v1760_v24, %v1760_v24 }
0x34a3   :  { %1765 = vrot.lane.b32.xlu1 %v1763_v25, %s2503_s13 }
0x34a9   :  { %v163_v1 = vpop.permute.xlu0 %162 }
0x34aa   :  { %v206_v26 = vmul.f32 %v2834_v10, %v163_v1 }
0x34ac   :  { %v236_v27 = vadd.f32 %v2840_v12, %v206_v26 }
0x34ae   :  { %261 = vst.msk [vmem:[#allocation2 + $0x28] sm:$0x3] %vm240_vm1, %v236_v27 }
0x34b5   :  { %v1762_v33 = vld [vmem:[#allocation2 + $0x28] sm:$0x3] }
0x3515   :  { %v1766_v28 = vpop.permute.xlu1 %1765 }
0x3516   :  { %2360 = vmatmul.mubr.msk.bf16.vlgmr.msra.gmra.mxu0 %vm278_vm2, %v1766_v28 }
0x3517   :  { %2372 = vmatpush3.bf16.msra.mxu0 %v2810_v44  ;;  %2375 = vmatprep.mubr.msk.bf16.mxu0 %vm2500_vm0, %v2499_v0 }
0x3518   :  { %2373 = vmatprep.subr.bf16.mxu0 %v2499_v0 }
0x351b   :  { %2374 = vmatpush3.bf16.msra.mxu0 %v2819_v7 }
0x35d6   :  { %v1804_v29 = vpop.f32.mrf.mxu0 }
0x35d7   :  { %v1810_v30 = vadd.f32 %v1804_v29, %v2582_v6  ;;  %v1811_v34 = vadd.f32 %v1804_v29, %v1762_v33 }
0x35d8   :  { %v2361_v3 = vpop.f32.mrf.mxu0 }
0x35d9   :  { %1817 = vrot.lane.b32.xlu1 %v1810_v30, %s2502_s30  ;;  %v1812_v35 = vmul.f32 0.5, %v1811_v34 }
0x35da   :  { %v1807_v31 = vpop.f32.mrf.mxu0 }
0x35db   :  { %2477 = vtanh.f32 %v1812_v35 }
0x35dc   :  { %v2362_v32 = vpop.f32.mrf.mxu0 }
0x35e8   :  { %v2478_v36 = vpop.eup %2477 }
0x35e9   :  { %v1814_v37 = vmul.f32 0.5, %v2478_v36 }
0x35eb   :  { %v1815_v38 = vadd.f32 0.5, %v1814_v37  ;;  %v59_v37 = vld [vmem:[%s3033_s0 + $0x2e] sm:$0x3] }
0x35ed   :  { %v1827_v45 = vsub.f32 1.0, %v1815_v38  ;;  %v1833_v47 = vmul.f32 %v1815_v38, %v1760_v24 }
0x364b   :  { %v1818_v39 = vpop.permute.xlu1 %1817 }
0x364c   :  { %v1820_v40 = vmul.f32 %v1818_v39, %v1815_v38 }
0x364e   :  { %1822 = vrot.lane.b32.xlu0 %v1820_v40, %s2502_s30 }
0x36c0   :  { %v1823_v41 = vpop.permute.xlu0 %1822 }
0x36c1   :  { %v1825_v42 = vadd.f32 %v1823_v41, %v1762_v33 }
0x36c3   :  { %2479 = vtanh.f32 %v1825_v42 }
0x36d0   :  { %v2480_v43 = vpop.eup %2479 }
0x36d1   :  { %1829 = vrot.lane.b32.xlu1 %v2480_v43, %s2503_s13 }
0x36d5   :  { %167 = vperm.xlu1 %2394, %v57_v8  }
0x3743   :  { %v1830_v46 = vpop.permute.xlu1 %1829 }
0x3744   :  { %v1832_v48 = vmul.f32 %v1830_v46, %v1827_v45 }
0x3746   :  { %v1834_v49 = vadd.f32 %v1833_v47, %v1832_v48 }
0x3748   :  { %v1837_v50 = vpack.c.bf16 %v1834_v49, %v1834_v49 }
0x374a   :  { %1839 = vrot.lane.b32.xlu0 %v1837_v50, %s2503_s13 }
0x3750   :  { %v168_v51 = vpop.permute.xlu1 %167 }
0x3751   :  { %v207_v52 = vmul.f32 %v2834_v10, %v168_v51 }
0x3753   :  { %v237_v53 = vadd.f32 %v2840_v12, %v207_v52 }
0x3755   :  { %262 = vst.msk [vmem:[#allocation2 + $0x2a] sm:$0x3] %vm240_vm1, %v237_v53 }
0x375c   :  { %v1836_v60 = vld [vmem:[#allocation2 + $0x2a] sm:$0x3] }
0x37bc   :  { %v1840_v54 = vpop.permute.xlu0 %1839 }
0x37bd   :  { %2368 = vmatmul.mubr.msk.bf16.vlgmr.msra.gmra.mxu1 %vm278_vm2, %v1840_v54 }
0x37be   :  { %2380 = vmatpush3.bf16.msra.mxu1 %v2810_v44  ;;  %2383 = vmatprep.mubr.msk.bf16.mxu1 %vm2500_vm0, %v2499_v0 }
0x37bf   :  { %2381 = vmatprep.subr.bf16.mxu1 %v2499_v0 }
0x37c2   :  { %2382 = vmatpush3.bf16.msra.mxu1 %v2819_v7 }
0x387d   :  { %v1878_v55 = vpop.f32.mrf.mxu1 }
0x387e   :  { %v1884_v56 = vadd.f32 %v1878_v55, %v2582_v6  ;;  %v1885_v61 = vadd.f32 %v1878_v55, %v1836_v60 }
0x387f   :  { %v2369_v57 = vpop.f32.mrf.mxu1 }
0x3880   :  { %1891 = vrot.lane.b32.xlu0 %v1884_v56, %s2502_s30  ;;  %v1886_v62 = vmul.f32 0.5, %v1885_v61 }
0x3881   :  { %v1881_v58 = vpop.f32.mrf.mxu1 }
0x3882   :  { %2481 = vtanh.f32 %v1886_v62  ;;  %v12_v62 = vstv %s3037_s6 }
0x3883   :  { %v2370_v59 = vpop.f32.mrf.mxu1  ;;  %13 = vst [vmem:[#allocation3] sm:$0x1] %v12_v62 }
0x388f   :  { %v2482_v44 = vpop.eup %2481 }
0x3890   :  { %v1888_v63 = vmul.f32 0.5, %v2482_v44 }
0x3892   :  { %v1889_v2 = vadd.f32 0.5, %v1888_v63 }
0x3894   :  { %v1901_v13 = vsub.f32 1.0, %v1889_v2  ;;  %v1907_v15 = vmul.f32 %v1889_v2, %v1834_v49 }
0x38f2   :  { %v1892_v4 = vpop.permute.xlu0 %1891 }
0x38f3   :  { %v1894_v5 = vmul.f32 %v1892_v4, %v1889_v2 }
0x38f5   :  { %1896 = vrot.lane.b32.xlu1 %v1894_v5, %s2502_s30 }
0x3967   :  { %v1897_v0 = vpop.permute.xlu1 %1896 }
0x3968   :  { %v1899_v7 = vadd.f32 %v1897_v0, %v1836_v60 }
0x396a   :  { %2483 = vtanh.f32 %v1899_v7 }
0x3977   :  { %v2484_v9 = vpop.eup %2483 }
0x3978   :  { %1903 = vrot.lane.b32.xlu0 %v2484_v9, %s2503_s13 }
0x397c   :  { %172 = vperm.xlu0 %2393, %v58_v11  }
0x39ea   :  { %v1904_v14 = vpop.permute.xlu0 %1903 }
0x39eb   :  { %v1906_v16 = vmul.f32 %v1904_v14, %v1901_v13  ;;  %v2122_v13 = vld [vmem:[#allocation3] ss:$0 sm:$0xff] }
0x39ed   :  { %v1908_v17 = vadd.f32 %v1907_v15, %v1906_v16 }
0x39ef   :  { %v1911_v18 = vpack.c.bf16 %v1908_v17, %v1908_v17 }
0x39f1   :  { %1913 = vrot.lane.b32.xlu1 %v1911_v18, %s2503_s13 }
0x39f7   :  { %v173_v19 = vpop.permute.xlu0 %172 }
0x39f8   :  { %v208_v20 = vmul.f32 %v2834_v10, %v173_v19 }
0x39fa   :  { %v238_v21 = vadd.f32 %v2840_v12, %v208_v20 }
0x39fc   :  { %263 = vst.msk [vmem:[#allocation2 + $0x2c] sm:$0x3] %vm240_vm1, %v238_v21 }
0x3a03   :  { %v1910_v27 = vld [vmem:[#allocation2 + $0x2c] sm:$0x3] }
0x3a63   :  { %v1914_v22 = vpop.permute.xlu1 %1913 }
0x3a64   :  { %2376 = vmatmul.mubr.msk.bf16.vlgmr.msra.gmra.mxu0 %vm278_vm2, %v1914_v22 }
0x3b24   :  { %v1952_v23 = vpop.f32.mrf.mxu0 }
0x3b25   :  { %v1958_v24 = vadd.f32 %v1952_v23, %v2582_v6  ;;  %v1959_v28 = vadd.f32 %v1952_v23, %v1910_v27 }
0x3b26   :  { %v2377_v25 = vpop.f32.mrf.mxu0 }
0x3b27   :  { %1965 = vrot.lane.b32.xlu1 %v1958_v24, %s2502_s30  ;;  %v1960_v29 = vmul.f32 0.5, %v1959_v28 }
0x3b28   :  { %v1955_v1 = vpop.f32.mrf.mxu0 }
0x3b29   :  { %2485 = vtanh.f32 %v1960_v29 }
0x3b2a   :  { %v2378_v26 = vpop.f32.mrf.mxu0 }
0x3b36   :  { %v2486_v30 = vpop.eup %2485 }
0x3b37   :  { %v1962_v3 = vmul.f32 0.5, %v2486_v30 }
0x3b39   :  { %v1963_v31 = vadd.f32 0.5, %v1962_v3 }
0x3b3b   :  { %v1975_v38 = vsub.f32 1.0, %v1963_v31  ;;  %v1981_v40 = vmul.f32 %v1963_v31, %v1908_v17 }
0x3b99   :  { %v1966_v32 = vpop.permute.xlu1 %1965 }
0x3b9a   :  { %v1968_v33 = vmul.f32 %v1966_v32, %v1963_v31 }
0x3b9c   :  { %1970 = vrot.lane.b32.xlu0 %v1968_v33, %s2502_s30 }
0x3c0e   :  { %v1971_v34 = vpop.permute.xlu0 %1970 }
0x3c0f   :  { %v1973_v35 = vadd.f32 %v1971_v34, %v1910_v27 }
0x3c11   :  { %2487 = vtanh.f32 %v1973_v35 }
0x3c1e   :  { %v2488_v36 = vpop.eup %2487 }
0x3c1f   :  { %1977 = vrot.lane.b32.xlu1 %v2488_v36, %s2503_s13 }
0x3c23   :  { %177 = vperm.xlu1 %2394, %v59_v37  }
0x3c91   :  { %v1978_v39 = vpop.permute.xlu1 %1977 }
0x3c92   :  { %v1980_v41 = vmul.f32 %v1978_v39, %v1975_v38 }
0x3c94   :  { %v1982_v42 = vadd.f32 %v1981_v40, %v1980_v41 }
0x3c96   :  { %v1985_v43 = vpack.c.bf16 %v1982_v42, %v1982_v42 }
0x3c98   :  { %1987 = vrot.lane.b32.xlu0 %v1985_v43, %s2503_s13 }
0x3c9e   :  { %v178_v8 = vpop.permute.xlu1 %177 }
0x3c9f   :  { %v209_v45 = vmul.f32 %v2834_v10, %v178_v8 }
0x3ca1   :  { %v239_v46 = vadd.f32 %v2840_v12, %v209_v45 }
0x3ca3   :  { %264 = vst.msk [vmem:[#allocation2 + $0x2e] sm:$0x3] %vm240_vm1, %v239_v46 }
0x3caa   :  { %v1984_v53 = vld [vmem:[#allocation2 + $0x2e] sm:$0x3] }
0x3d0a   :  { %v1988_v47 = vpop.permute.xlu0 %1987 }
0x3d0b   :  { %2384 = vmatmul.mubr.msk.bf16.vlgmr.msra.gmra.mxu1 %vm278_vm2, %v1988_v47 }
0x3dcb   :  { %v2026_v48 = vpop.f32.mrf.mxu1 }
0x3dcc   :  { %v2032_v49 = vadd.f32 %v2026_v48, %v2582_v6  ;;  %v2033_v54 = vadd.f32 %v2026_v48, %v1984_v53  ;;  %v2121_v6 = vld [vmem:[%s3036_s5] ss:$0 sm:$0xff] }
0x3dcd   :  { %v2385_v50 = vpop.f32.mrf.mxu1 }
0x3dce   :  { %2039 = vrot.lane.b32.xlu0 %v2032_v49, %s2502_s30  ;;  %v2034_v55 = vmul.f32 0.5, %v2033_v54 }
0x3dcf   :  { %v2029_v51 = vpop.f32.mrf.mxu1 }
0x3dd0   :  { %2489 = vtanh.f32 %v2034_v55 }
0x3dd1   :  { %v2386_v52 = vpop.f32.mrf.mxu1 }
0x3ddd   :  { %v2490_v10 = vpop.eup %2489 }
0x3dde   :  { %v2036_v56 = vmul.f32 0.5, %v2490_v10 }
0x3de0   :  { %v2037_v12 = vadd.f32 0.5, %v2036_v56 }
0x3de2   :  { %v2049_v44 = vsub.f32 1.0, %v2037_v12  ;;  %v2055_v4 = vmul.f32 %v2037_v12, %v1982_v42 }
0x3e40   :  { %v2040_v57 = vpop.permute.xlu0 %2039 }
0x3e41   :  { %v2042_v58 = vmul.f32 %v2040_v57, %v2037_v12 }
0x3e43   :  { %2044 = vrot.lane.b32.xlu1 %v2042_v58, %s2502_s30 }
0x3e47   :  { %2063 = vrot.lane.b32.xlu1 %v2121_v6, %s2504_s21 }
0x3eb5   :  { %v2045_v59 = vpop.permute.xlu1 %2044 }
0x3eb6   :  { %v2047_v60 = vadd.f32 %v2045_v59, %v1984_v53 }
0x3eb8   :  { %2491 = vtanh.f32 %v2047_v60 }
0x3eb9   :  { %v2064_v5 = vpop.permute.xlu1 %2063 }
0x3ec5   :  { %v2492_v61 = vpop.eup %2491 }
0x3ec6   :  { %2051 = vrot.lane.b32.xlu0 %v2492_v61, %s2503_s13 }
0x3f38   :  { %v2052_v63 = vpop.permute.xlu0 %2051 }
0x3f39   :  { %v2054_v2 = vmul.f32 %v2052_v63, %v2049_v44 }
0x3f3b   :  { %v2056_v0 = vadd.f32 %v2055_v4, %v2054_v2 }
0x3f3d   :  { %v2066_v7 = vmul.f32 %v2064_v5, %v2056_v0 }
0x3f3f   :  { %2068 = vrot.lane.b32.xlu0 %v2066_v7, %s2503_s13 }
0x3fb1   :  { %v2069_v9 = vpop.permute.xlu0 %2068 }
0x3fb2   :  { %v2072_v11 = vsel %vm2071_vm3, %v2069_v9, 0.0 }
0x3fb3   :  { %2073 = vadd.xlane.f32.xlu1 %v2072_v11 }
0x403c   :  { %v2074_v14 = vpop.xlane.xlu1 %2073 }
0x403d   :  { %v2082_v15 = vadd.f32 %v2122_v13, %v2074_v14 }
0x403f   :  { %v2083_v16 = vmul.f32 0.5, %v2082_v15 }
0x4041   :  { %2493 = vtanh.f32 %v2083_v16 }
0x404e   :  { %v2494_v17 = vpop.eup %2493 }
0x404f   :  { %v2085_v18 = vmul.f32 0.5, %v2494_v17 }
0x4051   :  { %v2086_v19 = vadd.f32 0.5, %v2085_v18 }
0x4053   :  { %2088 = vst.msk [vmem:[%s3038_s7] sm:$0x3] %vm2087_vm4, %v2086_v19 }

</bundles_post_ra>
